<compile_context>
chip_gen: v6e
topology: v6e:2x2x1
jax: 0.10.0
libtpu: 0.0.40
codegen_flags: <defaults>
</compile_context>

<pallas_src>
import functools

import jax
import jax.numpy as jnp
from jax.experimental import pallas as pl
from jax.experimental.pallas import tpu as pltpu

BN_EPS = 1e-5
FILTERS = 64   # matches the reference module's `filters = 64`

TAPS = ((0, 0), (0, 1), (1, 0), (1, 1))     # (dy, dx) input taps of the gathered 2x2 conv
PHASES = ((0, 0), (0, 1), (1, 0), (1, 1))   # (py, px) output sub-pixel phases


def _round_up(a, b):
    return (a + b - 1) // b * b


def _divisors(n):
    return [d for d in range(1, n + 1) if n % d == 0]


def _choose_row_tile(N, H, W, target_rows):
    """Largest image-row tile TH dividing H with TH*W <= target_rows.  Prefers tiles whose
    flattened row count is 8-aligned (f32 sublane tiling of the output block) and keeps a
    handful of grid steps so v7x's two TensorCores both get work."""
    cands = [d for d in _divisors(H) if d * W <= max(target_rows, W)]
    aligned = [d for d in cands if (d * W) % 8 == 0]
    if aligned:
        cands = aligned
    th = max(cands)
    while N * (H // th) < 4:
        smaller = [d for d in cands if d < th and d * W >= 256]
        if not smaller:
            break
        th = max(smaller)
    return th


# ---------------------------------------------------------------------------
# Kernel 1: BatchNorm batch statistics.
# The raw NCHW tensor is viewed as (N*C, H*W): lane-dense input, no NHWC transpose
# pass, no accumulator revisits (each row block is reduced fully in one step).
# ---------------------------------------------------------------------------
def _bn_stats_kernel(x_ref, sum_ref, sq_ref):
    x = x_ref[...].astype(jnp.float32)
    sum_ref[...] = jnp.sum(x, axis=1, keepdims=True)
    sq_ref[...] = jnp.sum(x * x, axis=1, keepdims=True)


def bn_batch_stats(x_nchw, *, tile_rows=256):
    """Per-channel sum and sum-of-squares over (N, H, W) via a lane-dense Pallas reduction."""
    N, C, H, W = x_nchw.shape
    HW = H * W
    R = N * C
    x2d = x_nchw.reshape(R, HW)

    rows_by_vmem = max(8, ((2 << 20) // (4 * HW)) // 8 * 8)   # keep input blocks ~2 MiB
    tile_rows = min(tile_rows, rows_by_vmem, _round_up(R, 8))
    Rp = _round_up(R, tile_rows)
    if Rp != R:
        x2d = jnp.pad(x2d, ((0, Rp - R), (0, 0)))             # zero rows are neutral

    s, sq = pl.pallas_call(
        _bn_stats_kernel,
        out_shape=(jax.ShapeDtypeStruct((Rp, 1), jnp.float32),
                   jax.ShapeDtypeStruct((Rp, 1), jnp.float32)),
        grid=(Rp // tile_rows,),
        in_specs=[pl.BlockSpec((tile_rows, HW), lambda i: (i, 0))],
        out_specs=(pl.BlockSpec((tile_rows, 1), lambda i: (i, 0)),
                   pl.BlockSpec((tile_rows, 1), lambda i: (i, 0))),
        compiler_params=pltpu.CompilerParams(dimension_semantics=("parallel",)),
        cost_estimate=pl.CostEstimate(flops=3 * Rp * HW, transcendentals=0,
                                      bytes_accessed=4 * (Rp * HW + 2 * Rp)),
    )(x2d)
    s = s[:R].reshape(N, C).sum(axis=0)
    sq = sq[:R].reshape(N, C).sum(axis=0)
    return s, sq


# ---------------------------------------------------------------------------
# Kernel 2: fused phase-decomposed ConvTranspose + bias + ReLU.
# Per grid step: a (TH+1, W+1, C) bf16 halo window of the BN-normalized activation is
# sliced into its 4 stride-2 taps, assembled into a (TH*W, 4C) patch block, and pushed
# through one clean K=4C bf16 MXU matmul with f32 accumulation; bias add + ReLU happen
# in f32 and the (TH*W, 4C) output block is lane-dense.
# ---------------------------------------------------------------------------
def _fused_convt_kernel(x_ref, w_ref, b_ref, o_ref, *, th, w, c):
    xb = x_ref[0]                                          # (th+1, w+1, c) window
    taps = [xb[dy:dy + th, dx:dx + w, :] for dy, dx in TAPS]
    p = jnp.concatenate(taps, axis=-1)                     # (th, w, 4c) patch slab
    p = p.reshape(th * w, 4 * c)
    acc = jnp.dot(p, w_ref[...], preferred_element_type=jnp.float32)   # MXU, f32 acc
    acc = acc + b_ref[...]                                 # conv bias (f32 broadcast)
    o_ref[...] = jnp.maximum(acc, 0.0).astype(o_ref.dtype)             # ReLU in f32


def _fused_convt_call(xwin, w_mat, bias_row, *, th, w, c):
    nr = xwin.shape[0]
    tm = th * w
    k = 4 * c

    in_bytes = xwin.dtype.itemsize
    xwin_block = (th + 1) * (w + 1) * c * in_bytes
    out_block = tm * k * 4
    w_bytes = k * k * w_mat.dtype.itemsize
    vmem_need = 2 * (xwin_block + out_block + w_bytes + k * 4) + (4 << 20)
    vmem_limit = int(min(64 << 20, max(16 << 20, vmem_need)))   # stays inside v7x's 64 MiB

    kernel = functools.partial(_fused_convt_kernel, th=th, w=w, c=c)
    return pl.pallas_call(
        kernel,
        out_shape=jax.ShapeDtypeStruct((nr * tm, k), jnp.float32),
        grid=(nr,),
        in_specs=[pl.BlockSpec((1, th + 1, w + 1, c), lambda i: (i, 0, 0, 0)),
                  pl.BlockSpec((k, k), lambda i: (0, 0)),     # weights stay VMEM-resident
                  pl.BlockSpec((1, k), lambda i: (0, 0))],    # bias row stays resident
        out_specs=pl.BlockSpec((tm, k), lambda i: (i, 0)),    # lane-dense 4C-wide store
        compiler_params=pltpu.CompilerParams(
            dimension_semantics=("parallel",),                # megacore over row blocks
            vmem_limit_bytes=vmem_limit),
        cost_estimate=pl.CostEstimate(
            flops=2 * nr * tm * k * k, transcendentals=0,
            bytes_accessed=nr * (xwin_block + out_block) + w_bytes + k * 4),
    )(xwin, w_mat, bias_row)


# ---------------------------------------------------------------------------
# ConvTranspose weight rearrangement: (Cin, Cout, 3, 3) -> (4*Cin, 4*Cout).
# ---------------------------------------------------------------------------
def _phase_decomposed_weight(wT):
    """Row (t, ci) for tap t=(dy,dx); column (p, co) for phase p=(py,px); entry is
    W[ci, co, py-2dy+1, px-2dx+1] when that kernel index lies inside 3x3, else 0."""
    Cin, Cout = wT.shape[0], wT.shape[1]
    wb = jnp.zeros((4, Cin, 4, Cout), jnp.float32)
    for t, (dy, dx) in enumerate(TAPS):
        for p, (py, px) in enumerate(PHASES):
            ky, kx = py - 2 * dy + 1, px - 2 * dx + 1
            if 0 <= ky < 3 and 0 <= kx < 3:
                wb = wb.at[t, :, p, :].set(wT[:, :, ky, kx].astype(jnp.float32))
    return wb.reshape(4 * Cin, 4 * Cout)


# ---------------------------------------------------------------------------
# Forward pass.
# ---------------------------------------------------------------------------
def bn_ucv_forward(x_nchw, params, *, tile_m=1024, stats_tile_rows=256,
                   matmul_dtype=jnp.bfloat16):
    gamma, beta = params["bn_gamma"], params["bn_beta"]
    wT, bias = params["convT_w"], params["convT_b"]       # wT: (Cin, Cout=Cin, 3, 3)

    N, C, H, W = x_nchw.shape

    # ---- BatchNorm batch statistics (training-mode, biased variance) ----
    s, sq = bn_batch_stats(x_nchw, tile_rows=stats_tile_rows)
    count = float(N * H * W)
    mean = s / count
    var = jnp.maximum(sq / count - mean * mean, 0.0)      # clamp guards f32 cancellation
    scale = gamma * jax.lax.rsqrt(var + BN_EPS)           # BN: xn = scale*x + shift
    shift = beta - mean * scale
    # TODO(synk): running_mean/running_var buffer updates (module training-state side
    # effect, not part of the returned tensor) are intentionally omitted.

    # ---- normalize, cast, halo-pad and cut into per-grid-step row windows ------------
    # Elementwise + copy work that XLA fuses into one pass producing the
    # (N*R, TH+1, W+1, C) window tensor the kernel consumes (~1x activation, bf16).
    xn = (x_nchw.astype(jnp.float32) * scale[None, :, None, None]
          + shift[None, :, None, None]).astype(matmul_dtype)
    xn = jnp.transpose(xn, (0, 2, 3, 1))                              # NHWC
    xpad = jnp.pad(xn, ((0, 0), (0, 1), (0, 1), (0, 0)))              # zero right/bottom halo

    TH = _choose_row_tile(N, H, W, tile_m)
    R = H // TH
    TM = TH * W
    assert TM % 8 == 0 or N * R == 1, (
        f"row tile {TH}x{W}={TM} must be 8-aligned for the (TM, 4C) output block")
    xwin = jnp.stack([xpad[:, r * TH:r * TH + TH + 1] for r in range(R)], axis=1)
    xwin = xwin.reshape(N * R, TH + 1, W + 1, C)

    # ---- fused ConvTranspose2d(k=3, s=2, p=1, op=1) + bias + ReLU --------------------
    w_mat = _phase_decomposed_weight(wT).astype(matmul_dtype)         # (4C, 4C)
    bias_row = jnp.tile(bias.astype(jnp.float32), 4).reshape(1, 4 * C)
    out2d = _fused_convt_call(xwin, w_mat, bias_row, th=TH, w=W, c=C)  # (N*H*W, 4C) f32

    # ---- 2x2 sub-pixel scatter back to NCHW (one fused XLA copy pass) ----------------
    # TODO(synk): emitting NCHW directly from the kernel needs an in-kernel
    # (rows, phase*C) -> (C, 2*rows, 2*cols) transpose; left to XLA for robustness.
    out = (out2d.reshape(N, H, W, 2, 2, C)
                 .transpose(0, 1, 3, 2, 4, 5)
                 .reshape(N, 2 * H, 2 * W, C))
    return jnp.transpose(out, (0, 3, 1, 2)).astype(x_nchw.dtype)


# ---------------------------------------------------------------------------
# Pure-JAX reference (independent check via lax.conv_general_dilated).
# ---------------------------------------------------------------------------
def bn_ucv_reference(x_nchw, params):
    gamma = params["bn_gamma"].reshape(1, -1, 1, 1)
    beta = params["bn_beta"].reshape(1, -1, 1, 1)
    wT, bias = params["convT_w"], params["convT_b"]

    mean = jnp.mean(x_nchw, axis=(0, 2, 3), keepdims=True)
    var = jnp.var(x_nchw, axis=(0, 2, 3), keepdims=True)      # biased (training norm)
    xn = (x_nchw - mean) * jax.lax.rsqrt(var + BN_EPS) * gamma + beta

    wc = jnp.flip(jnp.swapaxes(wT, 0, 1), axis=(2, 3))        # (Cout, Cin, 3, 3)
    y = jax.lax.conv_general_dilated(
        xn, wc, window_strides=(1, 1), padding=((1, 2), (1, 2)),
        lhs_dilation=(2, 2), rhs_dilation=(1, 1),
        dimension_numbers=("NCHW", "OIHW", "NCHW"))
    y = y + bias.reshape(1, -1, 1, 1)
    return jnp.maximum(y, 0.0)


def init_params(key, channels):
    k1, k2, k3, k4 = jax.random.split(key, 4)
    return {
        "bn_gamma": 1.0 + 0.1 * jax.random.normal(k1, (channels,), jnp.float32),
        "bn_beta": 0.1 * jax.random.normal(k2, (channels,), jnp.float32),
        "convT_w": 0.1 * jax.random.normal(k3, (channels, channels, 3, 3), jnp.float32),
        "convT_b": 0.1 * jax.random.normal(k4, (channels,), jnp.float32),
    }


if __name__ == "__main__":
    key = jax.random.PRNGKey(0)
    kx, kp = jax.random.split(key)

    N, C, H, W = 2, FILTERS, 16, 16     # module implies C = filters = 64
    x = jax.random.normal(kx, (N, C, H, W), jnp.float32)
    params = init_params(kp, C)

    fwd = jax.jit(functools.partial(bn_ucv_forward, tile_m=1024))            # bf16 MXU path
    fwd_f32 = jax.jit(functools.partial(bn_ucv_forward, tile_m=1024,
                                        matmul_dtype=jnp.float32))           # tight-check path

    out = jax.block_until_ready(fwd(x, params))
    out_f32 = jax.block_until_ready(fwd_f32(x, params))
    ref = jax.block_until_ready(bn_ucv_reference(x, params))

    assert out.shape == (N, C, 2 * H, 2 * W), out.shape
    err_f32 = jnp.max(jnp.abs(out_f32 - ref))
    assert jnp.allclose(out_f32, ref, rtol=1e-3, atol=1e-3), f"f32 path max abs err = {err_f32}"
    err_bf16 = jnp.max(jnp.abs(out - ref))
    assert jnp.allclose(out, ref, rtol=5e-2, atol=6e-2), f"bf16 path max abs err = {err_bf16}"
    print("KERNEL_OK")
</pallas_src>

<mosaic_0001>
module attributes {stable_mosaic.version = 11 : i64} {
  func.func @_bn_stats_kernel(%arg0: i32, %arg1: memref<128x256xf32, #tpu.memory_space<vmem>>, %arg2: memref<128x1xf32, #tpu.memory_space<vmem>>, %arg3: memref<128x1xf32, #tpu.memory_space<vmem>>) attributes {dimension_semantics = [#tpu.dimension_semantics<parallel>], iteration_bounds = array<i64: 1>, scalar_prefetch = 0 : i64, scratch_operands = 0 : i64, tpu.core_type = #tpu.core_type<tc>, window_params = [{transform_indices = @transform_0, window_bounds = array<i64: 128, 256>}, {transform_indices = @transform_1, window_bounds = array<i64: 128, 1>}, {transform_indices = @transform_2, window_bounds = array<i64: 128, 1>}]} {
    %c0 = arith.constant 0 : index
    %c0_0 = arith.constant 0 : index
    %0 = vector.load %arg1[%c0, %c0_0] : memref<128x256xf32, #tpu.memory_space<vmem>>, vector<128x256xf32>
    %cst = arith.constant dense<0.000000e+00> : vector<128xf32>
    %1 = vector.multi_reduction <add>, %0, %cst [1] : vector<128x256xf32> to vector<128xf32>
    %2 = vector.shape_cast %1 : vector<128xf32> to vector<128x1xf32>
    %c0_1 = arith.constant 0 : index
    %c0_2 = arith.constant 0 : index
    %3 = vector.load %arg2[%c0_1, %c0_2] : memref<128x1xf32, #tpu.memory_space<vmem>>, vector<128x1xf32>
    tpu.vector_store %arg2[%c0_1, %c0_2], %2 {strides = array<i32>} : memref<128x1xf32, #tpu.memory_space<vmem>>, vector<128x1xf32>,
    %4 = arith.mulf %0, %0 : vector<128x256xf32>
    %cst_3 = arith.constant dense<0.000000e+00> : vector<128xf32>
    %5 = vector.multi_reduction <add>, %4, %cst_3 [1] : vector<128x256xf32> to vector<128xf32>
    %6 = vector.shape_cast %5 : vector<128xf32> to vector<128x1xf32>
    %c0_4 = arith.constant 0 : index
    %c0_5 = arith.constant 0 : index
    %7 = vector.load %arg3[%c0_4, %c0_5] : memref<128x1xf32, #tpu.memory_space<vmem>>, vector<128x1xf32>
    tpu.vector_store %arg3[%c0_4, %c0_5], %6 {strides = array<i32>} : memref<128x1xf32, #tpu.memory_space<vmem>>, vector<128x1xf32>,
    return
  }
  func.func @transform_0(%arg0: i32) -> (i32, i32) {
    %c0_i32 = arith.constant 0 : i32
    %c0_i32_0 = arith.constant 0 : i32
    return %arg0, %c0_i32 : i32, i32
  }
  func.func @transform_1(%arg0: i32) -> (i32, i32) {
    %c0_i32 = arith.constant 0 : i32
    %c0_i32_0 = arith.constant 0 : i32
    return %arg0, %c0_i32 : i32, i32
  }
  func.func @transform_2(%arg0: i32) -> (i32, i32) {
    %c0_i32 = arith.constant 0 : i32
    %c0_i32_0 = arith.constant 0 : i32
    return %arg0, %c0_i32 : i32, i32
  }
}

module attributes {stable_mosaic.version = 11 : i64} {
  func.func @_fused_convt_kernel(%arg0: i32, %arg1: memref<1x17x17x64xbf16, #tpu.memory_space<vmem>>, %arg2: memref<256x256xbf16, #tpu.memory_space<vmem>>, %arg3: memref<1x256xf32, #tpu.memory_space<vmem>>, %arg4: memref<256x256xf32, #tpu.memory_space<vmem>>) attributes {dimension_semantics = [#tpu.dimension_semantics<parallel>], iteration_bounds = array<i64: 2>, scalar_prefetch = 0 : i64, scratch_operands = 0 : i64, tpu.core_type = #tpu.core_type<tc>, window_params = [{transform_indices = @transform_0, window_bounds = array<i64: 1, 17, 17, 64>}, {pipeline_mode = #tpu.pipeline_mode<synchronous>, transform_indices = @transform_1, window_bounds = array<i64: 256, 256>}, {pipeline_mode = #tpu.pipeline_mode<synchronous>, transform_indices = @transform_2, window_bounds = array<i64: 1, 256>}, {transform_indices = @transform_3, window_bounds = array<i64: 256, 256>}]} {
    %c0 = arith.constant 0 : index
    %c0_0 = arith.constant 0 : index
    %c0_1 = arith.constant 0 : index
    %c0_2 = arith.constant 0 : index
    %0 = vector.load %arg1[%c0, %c0_0, %c0_1, %c0_2] : memref<1x17x17x64xbf16, #tpu.memory_space<vmem>>, vector<1x17x17x64xbf16>
    %1 = vector.shape_cast %0 : vector<1x17x17x64xbf16> to vector<17x17x64xbf16>
    %2 = vector.extract_strided_slice %1 {offsets = [0, 0, 0], sizes = [16, 16, 64], strides = [1, 1, 1]} : vector<17x17x64xbf16> to vector<16x16x64xbf16>
    %3 = vector.extract_strided_slice %1 {offsets = [0, 1, 0], sizes = [16, 16, 64], strides = [1, 1, 1]} : vector<17x17x64xbf16> to vector<16x16x64xbf16>
    %4 = vector.extract_strided_slice %1 {offsets = [1, 0, 0], sizes = [16, 16, 64], strides = [1, 1, 1]} : vector<17x17x64xbf16> to vector<16x16x64xbf16>
    %5 = vector.extract_strided_slice %1 {offsets = [1, 1, 0], sizes = [16, 16, 64], strides = [1, 1, 1]} : vector<17x17x64xbf16> to vector<16x16x64xbf16>
    %6 = tpu.concatenate %2, %3, %4, %5 in 2 : vector<16x16x64xbf16>, vector<16x16x64xbf16>, vector<16x16x64xbf16>, vector<16x16x64xbf16> -> vector<16x16x256xbf16>
    %7 = vector.shape_cast %6 : vector<16x16x256xbf16> to vector<256x256xbf16>
    %c0_3 = arith.constant 0 : index
    %c0_4 = arith.constant 0 : index
    %8 = vector.load %arg2[%c0_3, %c0_4] : memref<256x256xbf16, #tpu.memory_space<vmem>>, vector<256x256xbf16>
    %cst = arith.constant dense<0.000000e+00> : vector<256x256xf32>
    %9 = tpu.matmul %7, %8, %cst {dimension_numbers = #tpu.dot_dimension_numbers<[1], [0], [0], [1], [0, 0, 1, 1], [], []>} : vector<256x256xbf16>, vector<256x256xbf16>, vector<256x256xf32> -> vector<256x256xf32>
    %c0_5 = arith.constant 0 : index
    %c0_6 = arith.constant 0 : index
    %10 = vector.load %arg3[%c0_5, %c0_6] : memref<1x256xf32, #tpu.memory_space<vmem>>, vector<1x256xf32>
    %11 = vector.broadcast %10 : vector<1x256xf32> to vector<256x256xf32>
    %12 = arith.addf %9, %11 : vector<256x256xf32>
    %cst_7 = arith.constant 0.000000e+00 : f32
    %13 = vector.broadcast %cst_7 : f32 to vector<256x256xf32>
    %14 = arith.maximumf %12, %13 : vector<256x256xf32>
    %c0_8 = arith.constant 0 : index
    %c0_9 = arith.constant 0 : index
    %15 = vector.load %arg4[%c0_8, %c0_9] : memref<256x256xf32, #tpu.memory_space<vmem>>, vector<256x256xf32>
    tpu.vector_store %arg4[%c0_8, %c0_9], %14 {strides = array<i32>} : memref<256x256xf32, #tpu.memory_space<vmem>>, vector<256x256xf32>,
    return
  }
  func.func @transform_0(%arg0: i32) -> (i32, i32, i32, i32) {
    %c0_i32 = arith.constant 0 : i32
    %c0_i32_0 = arith.constant 0 : i32
    %c0_i32_1 = arith.constant 0 : i32
    %c0_i32_2 = arith.constant 0 : i32
    return %arg0, %c0_i32, %c0_i32_0, %c0_i32_1 : i32, i32, i32, i32
  }
  func.func @transform_1(%arg0: i32) -> (i32, i32) {
    %c0_i32 = arith.constant 0 : i32
    %c0_i32_0 = arith.constant 0 : i32
    %c0_i32_1 = arith.constant 0 : i32
    return %c0_i32, %c0_i32_0 : i32, i32
  }
  func.func @transform_2(%arg0: i32) -> (i32, i32) {
    %c0_i32 = arith.constant 0 : i32
    %c0_i32_0 = arith.constant 0 : i32
    %c0_i32_1 = arith.constant 0 : i32
    return %c0_i32, %c0_i32_0 : i32, i32
  }
  func.func @transform_3(%arg0: i32) -> (i32, i32) {
    %c0_i32 = arith.constant 0 : i32
    %c0_i32_0 = arith.constant 0 : i32
    return %arg0, %c0_i32 : i32, i32
  }
}

</mosaic_0001>

<bundles_post_ra>
// kernel: tile.8
= control target key start
LH: loop header
LB: loop body
LE: loop exit
PB: predicated region body
PF: predicated region fallthrough
CT: control target
= control target key end

     0   :  { %s22_s0 = inlined_call_operand.vmem [shape: f32[64], index: 0, kind: input, shape index: {}]   ;;  %s23_s1 = inlined_call_operand.vmem [shape: f32[4,64], index: 1, kind: output, shape index: {}]  }
   0x1   :  { %v4_v0 = vld [vmem:[%s22_s0] ss:$0 sm:$0xff] }
   0x2   :  { %5 = vst [vmem:[%s23_s1] sm:$0xf] %v4_v0 }

// kernel: tile.9
= control target key start
LH: loop header
LB: loop body
LE: loop exit
PB: predicated region body
PF: predicated region fallthrough
CT: control target
= control target key end

     0   :  { %s7_s8 = smov 3  ;;  %vm9_vm0 = vcmask 523264   ;;  %s34_s9 = smov 64   ;;  %vm16_vm1 = vcmask 1048064   ;;  %s54_s0 = inlined_call_operand.vmem [shape: f32[4,64], index: 0, kind: input, shape index: {}]   ;;  %s55_s1 = inlined_call_operand.vmem [shape: f32[1,256], index: 1, kind: output, shape index: {}]  }
   0x1   :  { %v5_v0 = vld [vmem:[%s54_s0] sm:$0xf]  ;;  %s12_s0 = smov 3 }
   0x2   :  { %6 = vst [vmem:[#allocation1] sm:$0xf] %v5_v0 }
   0x9   :  { %v13_v1 = vld [vmem:[#allocation1 + $0x1] ss:$2 sm:%s12_s0]   ;;  %v8_v2 = vld [vmem:[#allocation1] ss:$2 sm:%s7_s8]  }
   0xa   :  { %14 = vrot.lane.b32.xlu0 %v13_v1, %s34_s9  ;;  %10 = vst.msk [vmem:[#allocation0] ss:$8 sm:$0x3] %vm9_vm0, %v8_v2  }
  0x7c   :  { %v15_v3 = vpop.permute.xlu0 %14  }
  0x7d   :  { %17 = vst.msk [vmem:[#allocation0] ss:$8 sm:$0x3] %vm16_vm1, %v15_v3  }
  0x84   :  { %v22_v4 = vld [vmem:[#allocation0] sm:$0x1]  ;;  %v27_v5 = vld [vmem:[#allocation0 + $0x8] sm:$0x1] }
  0x85   :  { %25 = vst [vmem:[%s55_s1] sm:$0x1] %v22_v4  ;;  %32 = vst [vmem:[%s55_s1 + $0x1] sm:$0x1] %v27_v5 }

// kernel: bn_ucv_forward.2
= control target key start
LH: loop header
LB: loop body
LE: loop exit
PB: predicated region body
PF: predicated region fallthrough
CT: control target
= control target key end

     0   :  { %vm90_vm0 = vcmask 7168   ;;  %s530_s0 = inlined_call_operand.vmem [shape: f32[128,256], index: 0, kind: input, shape index: {}]   ;;  %s531_s1 = inlined_call_operand.vmem [shape: f32[128,1], index: 1, kind: output, shape index: {0}]   ;;  %s532_s2 = inlined_call_operand.vmem [shape: f32[128,1], index: 2, kind: output, shape index: {1}]  }
   0x1   :  { %v229_v0 = vld [vmem:[%s530_s0 + $0x20] sm:$0xff]  ;;  %v234_v1 = vld [vmem:[%s530_s0 + $0x28] sm:$0xff]  ;;  %v247_v5 = vld [vmem:[%s530_s0 + $0x30] sm:$0xff] }
   0x2   :  { %v10_v2 = vld [vmem:[%s530_s0] sm:$0xff]  ;;  %v48_v3 = vadd.f32 %v234_v1, %v229_v0  ;;  %v11_v4 = vld [vmem:[%s530_s0 + $0x8] sm:$0xff]  ;;  %v252_v6 = vld [vmem:[%s530_s0 + $0x38] sm:$0xff]  ;;  %v113_v53 = vmul.f32 %v247_v5, %v247_v5  ;;  %v111_v55 = vmul.f32 %v229_v0, %v229_v0  ;;  %v112_v56 = vmul.f32 %v234_v1, %v234_v1 }
   0x3   :  { %v42_v7 = vadd.f32 %v11_v4, %v10_v2  ;;  %v12_v8 = vld [vmem:[%s530_s0 + $0x10] sm:$0xff]  ;;  %v13_v9 = vld [vmem:[%s530_s0 + $0x18] sm:$0xff]  ;;  %v51_v10 = vadd.f32 %v252_v6, %v247_v5  ;;  %v271_v14 = vld [vmem:[%s530_s0 + $0x40] sm:$0xff]  ;;  %v107_v49 = vmul.f32 %v10_v2, %v10_v2  ;;  %v108_v50 = vmul.f32 %v11_v4, %v11_v4 }
   0x4   :  { %49 = vadd.xlane.f32.xlu1 %v48_v3  ;;  %v45_v11 = vadd.f32 %v13_v9, %v12_v8  ;;  %v20_v12 = vld [vmem:[%s530_s0 + $0x50] sm:$0xff]  ;;  %v21_v13 = vld [vmem:[%s530_s0 + $0x58] sm:$0xff]  ;;  %v276_v15 = vld [vmem:[%s530_s0 + $0x48] sm:$0xff]  ;;  %v109_v47 = vmul.f32 %v12_v8, %v12_v8  ;;  %v110_v48 = vmul.f32 %v13_v9, %v13_v9  ;;  %v114_v54 = vmul.f32 %v252_v6, %v252_v6 }
   0x5   :  { %43 = vadd.xlane.f32.xlu0 %v42_v7  ;;  %v57_v16 = vadd.f32 %v21_v13, %v20_v12  ;;  %v54_v17 = vadd.f32 %v276_v15, %v271_v14  ;;  %v24_v18 = vld [vmem:[%s530_s0 + $0x70] sm:$0xff]  ;;  %v25_v19 = vld [vmem:[%s530_s0 + $0x78] sm:$0xff]  ;;  %v289_v20 = vld [vmem:[%s530_s0 + $0x60] sm:$0xff]  ;;  %v139_v57 = vadd.f32 %v108_v50, %v107_v49  ;;  %v117_v59 = vmul.f32 %v20_v12, %v20_v12 }
   0x6   :  { %v294_v21 = vld [vmem:[%s530_s0 + $0x68] sm:$0xff]  ;;  %v63_v22 = vadd.f32 %v25_v19, %v24_v18  ;;  %v28_v24 = vld [vmem:[%s530_s0 + $0x90] sm:$0xff]  ;;  %v29_v25 = vld [vmem:[%s530_s0 + $0x98] sm:$0xff]  ;;  %v142_v52 = vadd.f32 %v110_v48, %v109_v47  ;;  %v148_v58 = vadd.f32 %v114_v54, %v113_v53  ;;  %v118_v60 = vmul.f32 %v21_v13, %v21_v13 }
   0x7   :  { %v60_v23 = vadd.f32 %v294_v21, %v289_v20  ;;  %v307_v26 = vld [vmem:[%s530_s0 + $0x80] sm:$0xff]  ;;  %v312_v27 = vld [vmem:[%s530_s0 + $0x88] sm:$0xff]  ;;  %v69_v28 = vadd.f32 %v29_v25, %v28_v24  ;;  %v32_v30 = vld [vmem:[%s530_s0 + $0xb0] sm:$0xff]  ;;  %v145_v61 = vadd.f32 %v112_v56, %v111_v55  ;;  %v115_v62 = vmul.f32 %v271_v14, %v271_v14 }
   0x8   :  { %52 = vadd.xlane.f32.xlu1 %v51_v10  ;;  %v66_v29 = vadd.f32 %v312_v27, %v307_v26  ;;  %v33_v31 = vld [vmem:[%s530_s0 + $0xb8] sm:$0xff]  ;;  %v325_v32 = vld [vmem:[%s530_s0 + $0xa0] sm:$0xff]  ;;  %v330_v33 = vld [vmem:[%s530_s0 + $0xa8] sm:$0xff]  ;;  %v116_v63 = vmul.f32 %v276_v15, %v276_v15  ;;  %v154_v2 = vadd.f32 %v118_v60, %v117_v59  ;;  %v121_v0 = vmul.f32 %v24_v18, %v24_v18 }
   0x9   :  { %46 = vadd.xlane.f32.xlu0 %v45_v11  ;;  %v75_v34 = vadd.f32 %v33_v31, %v32_v30  ;;  %v72_v35 = vadd.f32 %v330_v33, %v325_v32  ;;  %v36_v36 = vld [vmem:[%s530_s0 + $0xd0] sm:$0xff]  ;;  %v37_v37 = vld [vmem:[%s530_s0 + $0xd8] sm:$0xff]  ;;  %v343_v38 = vld [vmem:[%s530_s0 + $0xc0] sm:$0xff]  ;;  %v122_v3 = vmul.f32 %v25_v19, %v25_v19  ;;  %v119_v4 = vmul.f32 %v289_v20, %v289_v20 }
   0xa   :  { %v348_v39 = vld [vmem:[%s530_s0 + $0xc8] sm:$0xff]  ;;  %v81_v40 = vadd.f32 %v37_v37, %v36_v36  ;;  %v40_v42 = vld [vmem:[%s530_s0 + $0xf0] sm:$0xff]  ;;  %v41_v43 = vld [vmem:[%s530_s0 + $0xf8] sm:$0xff]  ;;  %v151_v1 = vadd.f32 %v116_v63, %v115_v62  ;;  %v120_v5 = vmul.f32 %v294_v21, %v294_v21  ;;  %v125_v7 = vmul.f32 %v28_v24, %v28_v24 }
   0xb   :  { %v78_v41 = vadd.f32 %v348_v39, %v343_v38  ;;  %v361_v44 = vld [vmem:[%s530_s0 + $0xe0] sm:$0xff]  ;;  %v366_v45 = vld [vmem:[%s530_s0 + $0xe8] sm:$0xff]  ;;  %v87_v46 = vadd.f32 %v41_v43, %v40_v42  ;;  %v160_v6 = vadd.f32 %v122_v3, %v121_v0  ;;  %v126_v8 = vmul.f32 %v29_v25, %v29_v25 }
   0xc   :  { %58 = vadd.xlane.f32.xlu1 %v57_v16  ;;  %v84_v51 = vadd.f32 %v366_v45, %v361_v44  ;;  %v157_v9 = vadd.f32 %v120_v5, %v119_v4  ;;  %v123_v10 = vmul.f32 %v307_v26, %v307_v26  ;;  %v124_v11 = vmul.f32 %v312_v27, %v312_v27 }
   0xd   :  { %55 = vadd.xlane.f32.xlu0 %v54_v17  ;;  %v166_v12 = vadd.f32 %v126_v8, %v125_v7  ;;  %v129_v13 = vmul.f32 %v32_v30, %v32_v30  ;;  %v130_v14 = vmul.f32 %v33_v31, %v33_v31  ;;  %v127_v16 = vmul.f32 %v325_v32, %v325_v32 }
   0xe   :  { %v163_v15 = vadd.f32 %v124_v11, %v123_v10  ;;  %v128_v17 = vmul.f32 %v330_v33, %v330_v33  ;;  %v133_v19 = vmul.f32 %v36_v36, %v36_v36  ;;  %v134_v20 = vmul.f32 %v37_v37, %v37_v37 }
   0xf   :  { %v172_v18 = vadd.f32 %v130_v14, %v129_v13  ;;  %v137_v25 = vmul.f32 %v40_v42, %v40_v42  ;;  %v138_v26 = vmul.f32 %v41_v43, %v41_v43 }
  0x10   :  { %64 = vadd.xlane.f32.xlu1 %v63_v22  ;;  %v169_v21 = vadd.f32 %v128_v17, %v127_v16  ;;  %v131_v22 = vmul.f32 %v343_v38, %v343_v38  ;;  %v178_v24 = vadd.f32 %v134_v20, %v133_v19 }
  0x11   :  { %61 = vadd.xlane.f32.xlu0 %v60_v23  ;;  %v132_v23 = vmul.f32 %v348_v39, %v348_v39  ;;  %v184_v30 = vadd.f32 %v138_v26, %v137_v25 }
  0x13   :  { %v175_v27 = vadd.f32 %v132_v23, %v131_v22 }
  0x14   :  { %70 = vadd.xlane.f32.xlu1 %v69_v28  ;;  %v135_v28 = vmul.f32 %v361_v44, %v361_v44 }
  0x15   :  { %67 = vadd.xlane.f32.xlu0 %v66_v29  ;;  %v136_v29 = vmul.f32 %v366_v45, %v366_v45 }
  0x17   :  { %v181_v31 = vadd.f32 %v136_v29, %v135_v28 }
  0x18   :  { %76 = vadd.xlane.f32.xlu1 %v75_v34 }
  0x19   :  { %73 = vadd.xlane.f32.xlu0 %v72_v35 }
  0x1c   :  { %82 = vadd.xlane.f32.xlu1 %v81_v40 }
  0x1d   :  { %79 = vadd.xlane.f32.xlu0 %v78_v41 }
  0x20   :  { %88 = vadd.xlane.f32.xlu1 %v87_v46 }
  0x21   :  { %85 = vadd.xlane.f32.xlu0 %v84_v51 }
  0x24   :  { %143 = vadd.xlane.f32.xlu1 %v142_v52 }
  0x25   :  { %140 = vadd.xlane.f32.xlu0 %v139_v57 }
  0x28   :  { %149 = vadd.xlane.f32.xlu1 %v148_v58 }
  0x29   :  { %146 = vadd.xlane.f32.xlu0 %v145_v61 }
  0x2c   :  { %155 = vadd.xlane.f32.xlu1 %v154_v2 }
  0x2d   :  { %152 = vadd.xlane.f32.xlu0 %v151_v1 }
  0x30   :  { %161 = vadd.xlane.f32.xlu1 %v160_v6 }
  0x31   :  { %158 = vadd.xlane.f32.xlu0 %v157_v9 }
  0x34   :  { %167 = vadd.xlane.f32.xlu1 %v166_v12 }
  0x35   :  { %164 = vadd.xlane.f32.xlu0 %v163_v15 }
  0x38   :  { %173 = vadd.xlane.f32.xlu1 %v172_v18 }
  0x39   :  { %170 = vadd.xlane.f32.xlu0 %v169_v21 }
  0x3c   :  { %179 = vadd.xlane.f32.xlu1 %v178_v24 }
  0x3d   :  { %176 = vadd.xlane.f32.xlu0 %v175_v27 }
  0x40   :  { %185 = vadd.xlane.f32.xlu1 %v184_v30 }
  0x41   :  { %182 = vadd.xlane.f32.xlu0 %v181_v31 }
  0x8d   :  { %v50_v32 = vpop.xlane.xlu1 %49 }
  0x8e   :  { %93 = vst.msk [vmem:[%s531_s1 + $0x10] sm:$0xff] %vm90_vm0, %v50_v32  ;;  %v44_v33 = vpop.xlane.xlu0 %43 }
  0x8f   :  { %91 = vst.msk [vmem:[%s531_s1] sm:$0xff] %vm90_vm0, %v44_v33 }
  0x91   :  { %v53_v34 = vpop.xlane.xlu1 %52 }
  0x92   :  { %94 = vst.msk [vmem:[%s531_s1 + $0x18] sm:$0xff] %vm90_vm0, %v53_v34  ;;  %v47_v35 = vpop.xlane.xlu0 %46 }
  0x93   :  { %92 = vst.msk [vmem:[%s531_s1 + $0x8] sm:$0xff] %vm90_vm0, %v47_v35 }
  0x95   :  { %v59_v36 = vpop.xlane.xlu1 %58 }
  0x96   :  { %96 = vst.msk [vmem:[%s531_s1 + $0x28] sm:$0xff] %vm90_vm0, %v59_v36  ;;  %v56_v37 = vpop.xlane.xlu0 %55 }
  0x97   :  { %95 = vst.msk [vmem:[%s531_s1 + $0x20] sm:$0xff] %vm90_vm0, %v56_v37 }
  0x99   :  { %v65_v38 = vpop.xlane.xlu1 %64 }
  0x9a   :  { %98 = vst.msk [vmem:[%s531_s1 + $0x38] sm:$0xff] %vm90_vm0, %v65_v38  ;;  %v62_v39 = vpop.xlane.xlu0 %61 }
  0x9b   :  { %97 = vst.msk [vmem:[%s531_s1 + $0x30] sm:$0xff] %vm90_vm0, %v62_v39 }
  0x9d   :  { %v71_v40 = vpop.xlane.xlu1 %70 }
  0x9e   :  { %100 = vst.msk [vmem:[%s531_s1 + $0x48] sm:$0xff] %vm90_vm0, %v71_v40  ;;  %v68_v41 = vpop.xlane.xlu0 %67 }
  0x9f   :  { %99 = vst.msk [vmem:[%s531_s1 + $0x40] sm:$0xff] %vm90_vm0, %v68_v41 }
  0xa1   :  { %v77_v42 = vpop.xlane.xlu1 %76 }
  0xa2   :  { %102 = vst.msk [vmem:[%s531_s1 + $0x58] sm:$0xff] %vm90_vm0, %v77_v42  ;;  %v74_v43 = vpop.xlane.xlu0 %73 }
  0xa3   :  { %101 = vst.msk [vmem:[%s531_s1 + $0x50] sm:$0xff] %vm90_vm0, %v74_v43 }
  0xa5   :  { %v83_v44 = vpop.xlane.xlu1 %82 }
  0xa6   :  { %104 = vst.msk [vmem:[%s531_s1 + $0x68] sm:$0xff] %vm90_vm0, %v83_v44  ;;  %v80_v45 = vpop.xlane.xlu0 %79 }
  0xa7   :  { %103 = vst.msk [vmem:[%s531_s1 + $0x60] sm:$0xff] %vm90_vm0, %v80_v45 }
  0xa9   :  { %v89_v46 = vpop.xlane.xlu1 %88 }
  0xaa   :  { %106 = vst.msk [vmem:[%s531_s1 + $0x78] sm:$0xff] %vm90_vm0, %v89_v46  ;;  %v86_v47 = vpop.xlane.xlu0 %85 }
  0xab   :  { %105 = vst.msk [vmem:[%s531_s1 + $0x70] sm:$0xff] %vm90_vm0, %v86_v47 }
  0xad   :  { %v144_v48 = vpop.xlane.xlu1 %143 }
  0xae   :  { %188 = vst.msk [vmem:[%s532_s2 + $0x8] sm:$0xff] %vm90_vm0, %v144_v48  ;;  %v141_v49 = vpop.xlane.xlu0 %140 }
  0xaf   :  { %187 = vst.msk [vmem:[%s532_s2] sm:$0xff] %vm90_vm0, %v141_v49 }
  0xb1   :  { %v150_v50 = vpop.xlane.xlu1 %149 }
  0xb2   :  { %190 = vst.msk [vmem:[%s532_s2 + $0x18] sm:$0xff] %vm90_vm0, %v150_v50  ;;  %v147_v51 = vpop.xlane.xlu0 %146 }
  0xb3   :  { %189 = vst.msk [vmem:[%s532_s2 + $0x10] sm:$0xff] %vm90_vm0, %v147_v51 }
  0xb5   :  { %v156_v52 = vpop.xlane.xlu1 %155 }
  0xb6   :  { %192 = vst.msk [vmem:[%s532_s2 + $0x28] sm:$0xff] %vm90_vm0, %v156_v52  ;;  %v153_v53 = vpop.xlane.xlu0 %152 }
  0xb7   :  { %191 = vst.msk [vmem:[%s532_s2 + $0x20] sm:$0xff] %vm90_vm0, %v153_v53 }
  0xb9   :  { %v162_v54 = vpop.xlane.xlu1 %161 }
  0xba   :  { %194 = vst.msk [vmem:[%s532_s2 + $0x38] sm:$0xff] %vm90_vm0, %v162_v54  ;;  %v159_v55 = vpop.xlane.xlu0 %158 }
  0xbb   :  { %193 = vst.msk [vmem:[%s532_s2 + $0x30] sm:$0xff] %vm90_vm0, %v159_v55 }
  0xbd   :  { %v168_v56 = vpop.xlane.xlu1 %167 }
  0xbe   :  { %196 = vst.msk [vmem:[%s532_s2 + $0x48] sm:$0xff] %vm90_vm0, %v168_v56  ;;  %v165_v57 = vpop.xlane.xlu0 %164 }
  0xbf   :  { %195 = vst.msk [vmem:[%s532_s2 + $0x40] sm:$0xff] %vm90_vm0, %v165_v57 }
  0xc1   :  { %v174_v58 = vpop.xlane.xlu1 %173 }
  0xc2   :  { %198 = vst.msk [vmem:[%s532_s2 + $0x58] sm:$0xff] %vm90_vm0, %v174_v58  ;;  %v171_v59 = vpop.xlane.xlu0 %170 }
  0xc3   :  { %197 = vst.msk [vmem:[%s532_s2 + $0x50] sm:$0xff] %vm90_vm0, %v171_v59 }
  0xc5   :  { %v180_v60 = vpop.xlane.xlu1 %179 }
  0xc6   :  { %200 = vst.msk [vmem:[%s532_s2 + $0x68] sm:$0xff] %vm90_vm0, %v180_v60  ;;  %v177_v61 = vpop.xlane.xlu0 %176 }
  0xc7   :  { %199 = vst.msk [vmem:[%s532_s2 + $0x60] sm:$0xff] %vm90_vm0, %v177_v61 }
  0xc9   :  { %v186_v62 = vpop.xlane.xlu1 %185 }
  0xca   :  { %202 = vst.msk [vmem:[%s532_s2 + $0x78] sm:$0xff] %vm90_vm0, %v186_v62  ;;  %v183_v63 = vpop.xlane.xlu0 %182 }
  0xcb   :  { %201 = vst.msk [vmem:[%s532_s2 + $0x70] sm:$0xff] %vm90_vm0, %v183_v63 }

// kernel: bn_ucv_forward.3
= control target key start
LH: loop header
LB: loop body
LE: loop exit
PB: predicated region body
PF: predicated region fallthrough
CT: control target
= control target key end

     0   :  { %s1466_s12 = smov 0   ;;  %s1893_s0 = inlined_call_operand.vmem [shape: bf16[2,17,17,64], index: 0, kind: input, shape index: {}]   ;;  %s1894_s1 = inlined_call_operand.vmem [shape: bf16[256,256], index: 1, kind: input, shape index: {}]   ;;  %s1895_s2 = inlined_call_operand.vmem [shape: f32[1,256], index: 2, kind: input, shape index: {}]   ;;  %s1896_s3 = inlined_call_operand.vmem [shape: f32[512,256], index: 3, kind: output, shape index: {}]  }
   0x1 LB: > { %s1472_s13 = sadd.s32 4294967295, %s1443_s12   ;;  %p1239_p0 = scmp.ge.s32.totalorder %s1443_s12, 1  ;;  %s1443_s12 = sphi %s1466_s12, %s13_s12  }
   0x2   : > { %p137_p1 = scmp.lt.s32.totalorder %s1443_s12, 3 }
   0x4   : > { %p138_p2 = pnand %p1239_p0, %p137_p1 }
   0x5   : > { %p162_p3 = scmp.lt.s32.totalorder (!%p138_p2), %s1472_s13, 1  ;;  %s1445_s14 = smov (!%p138_p2), 64  }
   0x6   : > { %141 = sbr.rel (%p138_p2) target bundleno = 406 (0x196), region = 32  ;;  %s1241_s7 = sshll.u32 (!%p138_p2), %s1472_s13, 5 }
   0x7   : > { %p168_p4 = scmp.lt.s32.totalorder (!%p138_p2), %s1241_s7, 63 }
   0xb   : > { %v1387_v0 = vld [vmem:[%s1894_s1 + $0x74] ss:$8 sps:$4 sm:$0xff]   ;;  %v1389_v1 = vld [vmem:[%s1894_s1 + $0x70] ss:$8 sps:$4 sm:$0xff]   ;;  %s163_s18 = scalar_select %p162_p3, %s1472_s13, 1  ;;  %vm600_vm1 = vcmask 523264  }
   0xc   : > { %v1390_v2 = vld [vmem:[%s1894_s1 + $0x64] ss:$8 sps:$4 sm:$0xff]   ;;  %856 = vmatprep.subr.bf16.mxu0 %v1387_v0  ;;  %1313 = vmatprep.subr.bf16.mxu1 %v1387_v0  ;;  %v1392_v3 = vld [vmem:[%s1894_s1 + $0x60] ss:$8 sps:$4 sm:$0xff]   ;;  %v1395_v4 = vld [vmem:[%s1894_s1 + $0x54] ss:$8 sps:$4 sm:$0xff]  }
   0xd   : > { %s1345_s21 = smul.u32 204, %s163_s18  ;;  %857 = vmatpush1.bf16.msra.mxu0 %v1389_v1  ;;  %1329 = vmatpush1.bf16.msra.mxu1 %v1389_v1  ;;  %vm353_vm0 = vsmask.f32 7424  ;;  %v1397_v5 = vld [vmem:[%s1894_s1 + $0x50] ss:$8 sps:$4 sm:$0xff]   ;;  %s1898_s7 = smov (!%p168_p4, %s1241_s7), 63 }
   0xe   : > { %858 = vmatprep.subr.bf16.mxu0 %v1390_v2  ;;  %1314 = vmatprep.subr.bf16.mxu1 %v1390_v2  ;;  %v1398_v6 = vld [vmem:[%s1894_s1 + $0x44] ss:$8 sps:$4 sm:$0xff]   ;;  %v1400_v14 = vld [vmem:[%s1894_s1 + $0x40] ss:$8 sps:$4 sm:$0xff]   ;;  %v1401_v17 = vld [vmem:[%s1894_s1 + $0x34] ss:$8 sps:$4 sm:$0xff]  }
   0xf   : > { %s1496_s28 = scalar_lea.vmem %s1893_s0, %s1345_s21  ;;  %v1403_v29 = vld [vmem:[%s1894_s1 + $0x30] ss:$8 sps:$4 sm:$0xff]   ;;  %s1312_s10 = sshll.u32 %s1898_s7, 4 }
  0x10   : > { %v1505_v7 = vld [vmem:[%s1496_s28 + $0xc] sm:$0xff]   ;;  %v1356_v8 = vld [vmem:[%s1496_s28 + $0x14] ss:$0 sps:$4 sm:$0x11]   ;;  %v1509_v9 = vld [vmem:[%s1496_s28] sm:$0xff]   ;;  %s1761_s13 = scalar_lea.vmem %s1896_s3, %s1312_s10 }
  0x11   : > { %859 = vmatpush1.bf16.msra.mxu0 %v1392_v3  ;;  %1330 = vmatpush1.bf16.msra.mxu1 %v1392_v3  ;;  %v367_v10 = vshrl.u32 %v1505_v7, 16  ;;  %v369_v11 = vshll.u32 %v1505_v7, 16  ;;  %v374_v12 = vshll.u32 %v1356_v8, 16  ;;  %v1358_v13 = vld [vmem:[%s1496_s28 + $0x8] ss:$0 sps:$4 sm:$0x11]  }
  0x12   : > { %860 = vmatprep.subr.bf16.mxu0 %v1395_v4  ;;  %1315 = vmatprep.subr.bf16.mxu1 %v1395_v4  ;;  %v355_v15 = vshrl.u32 %v1509_v9, 16  ;;  %v357_v16 = vshll.u32 %v1509_v9, 16  ;;  %v362_v20 = vshll.u32 %v1358_v13, 16  ;;  %v1523_v21 = vld [vmem:[%s1496_s28 + $0x6c] sm:$0xff]   ;;  %v1529_v28 = vld [vmem:[%s1496_s28 + $0x60] sm:$0xff]   ;;  %v1539_v37 = vld [vmem:[%s1496_s28 + $0x18] sm:$0xff]  }
  0x13   : > { %v371_v18 = vrot.slane %v369_v11, 1  ;;  %v376_v19 = vrot.slane %v374_v12, 1  ;;  %v1360_v23 = vld [vmem:[%s1496_s28 + $0x74] ss:$0 sps:$4 sm:$0x11]   ;;  %v463_v26 = vshrl.u32 %v1523_v21, 16 }
  0x14   : > { %v359_v22 = vrot.slane %v357_v16, 1  ;;  %v364_v25 = vrot.slane %v362_v20, 1  ;;  %v465_v27 = vshll.u32 %v1523_v21, 16  ;;  %v470_v31 = vshll.u32 %v1360_v23, 16  ;;  %v1548_v47 = vld [vmem:[%s1496_s28 + $0x78] sm:$0xff]   ;;  %v1556_v55 = vld [vmem:[%s1496_s28 + $0x24] sm:$0xff]  }
  0x15   : > { %861 = vmatpush1.bf16.msra.mxu0 %v1397_v5  ;;  %1331 = vmatpush1.bf16.msra.mxu1 %v1397_v5  ;;  %v372_v24 = vor.u32 %v371_v18, %v367_v10  ;;  %v1362_v32 = vld [vmem:[%s1496_s28 + $0x68] ss:$0 sps:$4 sm:$0x11]   ;;  %v451_v35 = vshrl.u32 %v1529_v28, 16  ;;  %v453_v36 = vshll.u32 %v1529_v28, 16  ;;  %v379_v44 = vshrl.u32 %v1539_v37, 16 }
  0x16   : > { %862 = vmatprep.subr.bf16.mxu0 %v1398_v6  ;;  %1316 = vmatprep.subr.bf16.mxu1 %v1398_v6  ;;  %v360_v30 = vor.u32 %v359_v22, %v355_v15  ;;  %v467_v34 = vrot.slane %v465_v27, 1  ;;  %v472_v39 = vrot.slane %v470_v31, 1  ;;  %v458_v40 = vshll.u32 %v1362_v32, 16  ;;  %v1364_v43 = vld [vmem:[%s1496_s28 + $0x20] ss:$0 sps:$4 sm:$0x11]  }
  0x17   : > { %v377_v33 = vsel %vm353_vm0, %v372_v24, %v376_v19  ;;  %v455_v42 = vrot.slane %v453_v36, 1  ;;  %v381_v45 = vshll.u32 %v1539_v37, 16  ;;  %v386_v51 = vshll.u32 %v1364_v43, 16  ;;  %v1366_v52 = vld [vmem:[%s1496_s28 + $0x80] ss:$0 sps:$4 sm:$0x11]  }
  0x18   : > { %548 = vrot.lane.b32.xlu0 %v377_v33, %s1445_s14  ;;  %v365_v38 = vsel %vm353_vm0, %v360_v30, %v364_v25  ;;  %v468_v41 = vor.u32 %v467_v34, %v463_v26  ;;  %v460_v46 = vrot.slane %v458_v40, 1  ;;  %v475_v53 = vshrl.u32 %v1548_v47, 16  ;;  %v1560_v59 = vld [vmem:[%s1496_s28 + $0x84] sm:$0xff]   ;;  %v1368_v62 = vld [vmem:[%s1496_s28 + $0x2c] ss:$0 sps:$4 sm:$0x11]  }
  0x19   : > { %863 = vmatpush1.bf16.msra.mxu0 %v1400_v14  ;;  %1332 = vmatpush1.bf16.msra.mxu1 %v1400_v14  ;;  %v456_v49 = vor.u32 %v455_v42, %v451_v35  ;;  %v383_v50 = vrot.slane %v381_v45, 1  ;;  %v477_v54 = vshll.u32 %v1548_v47, 16  ;;  %v388_v58 = vrot.slane %v386_v51, 1  ;;  %v1571_v8 = vld [vmem:[%s1496_s28 + $0x30] sm:$0xff]  }
  0x1a   : > { %864 = vmatprep.subr.bf16.mxu0 %v1401_v17  ;;  %546 = vrot.lane.b32.xlu1 %v365_v38, %s1445_s14  ;;  %v473_v48 = vsel %vm353_vm0, %v468_v41, %v472_v39  ;;  %v482_v61 = vshll.u32 %v1366_v52, 16  ;;  %v391_v63 = vshrl.u32 %v1556_v55, 16  ;;  %v393_v1 = vshll.u32 %v1556_v55, 16  ;;  %v1370_v11 = vld [vmem:[%s1496_s28 + $0x8c] ss:$0 sps:$4 sm:$0x11]  }
  0x1b   : > { %1317 = vmatprep.subr.bf16.mxu1 %v1401_v17  ;;  %v461_v56 = vsel %vm353_vm0, %v456_v49, %v460_v46  ;;  %v384_v57 = vor.u32 %v383_v50, %v379_v44  ;;  %v479_v60 = vrot.slane %v477_v54, 1  ;;  %v487_v2 = vshrl.u32 %v1560_v59, 16  ;;  %v1372_v17 = vld [vmem:[%s1496_s28 + $0x38] ss:$0 sps:$4 sm:$0x11]   ;;  %v1581_v26 = vld [vmem:[%s1496_s28 + $0x90] sm:$0xff]  }
  0x1c   : > { %564 = vrot.lane.b32.xlu0 %v473_v48, %s1445_s14  ;;  %v484_v4 = vrot.slane %v482_v61, 1  ;;  %v398_v5 = vshll.u32 %v1368_v62, 16  ;;  %v489_v6 = vshll.u32 %v1560_v59, 16  ;;  %v395_v10 = vrot.slane %v393_v1, 1  ;;  %v1597_v41 = vld [vmem:[%s1496_s28 + $0x9c] sm:$0xff]   ;;  %v1604_v50 = vld [vmem:[%s1496_s28 + $0x48] sm:$0xff]  }
  0x1d   : > { %865 = vmatpush1.bf16.msra.mxu0 %v1403_v29  ;;  %1333 = vmatpush1.bf16.msra.mxu1 %v1403_v29  ;;  %v389_v0 = vsel %vm353_vm0, %v384_v57, %v388_v58  ;;  %v480_v3 = vor.u32 %v479_v60, %v475_v53  ;;  %v494_v16 = vshll.u32 %v1370_v11, 16  ;;  %v403_v18 = vshrl.u32 %v1571_v8, 16  ;;  %v1374_v27 = vld [vmem:[%s1496_s28 + $0x98] ss:$0 sps:$4 sm:$0x11]   ;;  %v1586_v29 = vld [vmem:[%s1496_s28 + $0x3c] sm:$0xff]  }
  0x1e   : > { %562 = vrot.lane.b32.xlu1 %v461_v56, %s1445_s14  ;;  %v400_v13 = vrot.slane %v398_v5, 1  ;;  %v491_v14 = vrot.slane %v489_v6, 1  ;;  %v396_v15 = vor.u32 %v395_v10, %v391_v63  ;;  %v405_v19 = vshll.u32 %v1571_v8, 16  ;;  %v1376_v36 = vld [vmem:[%s1496_s28 + $0x44] ss:$0 sps:$4 sm:$0x11]  }
  0x1f   : > { %v485_v12 = vsel %vm353_vm0, %v480_v3, %v484_v4  ;;  %v496_v23 = vrot.slane %v494_v16, 1  ;;  %v410_v25 = vshll.u32 %v1372_v17, 16  ;;  %v499_v33 = vshrl.u32 %v1581_v26, 16  ;;  %v1378_v45 = vld [vmem:[%s1496_s28 + $0xa4] ss:$0 sps:$4 sm:$0x11]  }
  0x20   : > { %550 = vrot.lane.b32.xlu0 %v389_v0, %s1445_s14  ;;  %v492_v20 = vor.u32 %v491_v14, %v487_v2  ;;  %v401_v22 = vsel %vm353_vm0, %v396_v15, %v400_v13  ;;  %v407_v24 = vrot.slane %v405_v19, 1  ;;  %v501_v34 = vshll.u32 %v1581_v26, 16  ;;  %v1380_v57 = vld [vmem:[%s1496_s28 + $0x50] ss:$0 sps:$4 sm:$0x11]   ;;  %v1611_v63 = vld [vmem:[%s1496_s28 + $0xa8] sm:$0xff]  }
  0x21   : > { %v412_v32 = vrot.slane %v410_v25, 1  ;;  %v506_v35 = vshll.u32 %v1374_v27, 16  ;;  %v415_v38 = vshrl.u32 %v1586_v29, 16  ;;  %v417_v40 = vshll.u32 %v1586_v29, 16  ;;  %v1620_v10 = vld [vmem:[%s1496_s28 + $0x54] sm:$0xff]  }
  0x22   : > { %566 = vrot.lane.b32.xlu1 %v485_v12, %s1445_s14  ;;  %v497_v30 = vsel %vm353_vm0, %v492_v20, %v496_v23  ;;  %v408_v31 = vor.u32 %v407_v24, %v403_v18  ;;  %v503_v42 = vrot.slane %v501_v34, 1  ;;  %v422_v44 = vshll.u32 %v1376_v36, 16  ;;  %v1382_v4 = vld [vmem:[%s1496_s28 + $0xb0] ss:$0 sps:$4 sm:$0x11]   ;;  %v1624_v14 = vld [vmem:[%s1496_s28 + $0xb4] sm:$0xff]  }
  0x23   : > { %v508_v43 = vrot.slane %v506_v35, 1  ;;  %v419_v46 = vrot.slane %v417_v40, 1  ;;  %v511_v48 = vshrl.u32 %v1597_v41, 16  ;;  %v513_v49 = vshll.u32 %v1597_v41, 16 }
  0x24   : > { %552 = vrot.lane.b32.xlu0 %v401_v22, %s1445_s14  ;;  %v413_v39 = vsel %vm353_vm0, %v408_v31, %v412_v32  ;;  %v504_v51 = vor.u32 %v503_v42, %v499_v33  ;;  %v424_v52 = vrot.slane %v422_v44, 1  ;;  %v518_v53 = vshll.u32 %v1378_v45, 16  ;;  %v1384_v17 = vld [vmem:[%s1496_s28 + $0x5c] ss:$0 sps:$4 sm:$0x11]  }
  0x25   : > { %v420_v54 = vor.u32 %v419_v46, %v415_v38  ;;  %v515_v56 = vrot.slane %v513_v49, 1  ;;  %v427_v58 = vshrl.u32 %v1604_v50, 16  ;;  %v429_v60 = vshll.u32 %v1604_v50, 16  ;;  %v1386_v32 = vld [vmem:[%s1496_s28 + $0xbc] ss:$0 sps:$4 sm:$0x11]  }
  0x26   : > { %568 = vrot.lane.b32.xlu1 %v497_v30, %s1445_s14  ;;  %v509_v61 = vsel %vm353_vm0, %v504_v51, %v508_v43  ;;  %v520_v62 = vrot.slane %v518_v53, 1  ;;  %v434_v3 = vshll.u32 %v1380_v57, 16  ;;  %v523_v5 = vshrl.u32 %v1611_v63, 16  ;;  %v1635_v30 = vld [vmem:[%s1496_s28 + $0xc0] sm:$0xff]   ;;  %v1409_v57 = vld [vmem:[%s1894_s1 + $0x10] ss:$8 sps:$4 sm:$0xff]  }
  0x27   : > { %v425_v0 = vsel %vm353_vm0, %v420_v54, %v424_v52  ;;  %v516_v1 = vor.u32 %v515_v56, %v511_v48  ;;  %v431_v2 = vrot.slane %v429_v60, 1  ;;  %v525_v6 = vshll.u32 %v1611_v63, 16  ;;  %v1404_v44 = vld [vmem:[%s1894_s1 + $0x24] ss:$8 sps:$4 sm:$0xff]   ;;  %v1406_v51 = vld [vmem:[%s1894_s1 + $0x20] ss:$8 sps:$4 sm:$0xff]  }
  0x28   : > { %554 = vrot.lane.b32.xlu0 %v413_v39, %s1445_s14  ;;  %v436_v13 = vrot.slane %v434_v3, 1  ;;  %v530_v16 = vshll.u32 %v1382_v4, 16  ;;  %v439_v18 = vshrl.u32 %v1620_v10, 16  ;;  %v441_v20 = vshll.u32 %v1620_v10, 16  ;;  %866 = vmatprep.subr.bf16.mxu0 %v1404_v44  ;;  %v1407_v52 = vld [vmem:[%s1894_s1 + $0x14] ss:$8 sps:$4 sm:$0xff]  }
  0x29   : > { %v521_v11 = vsel %vm353_vm0, %v516_v1, %v520_v62  ;;  %v432_v12 = vor.u32 %v431_v2, %v427_v58  ;;  %v527_v15 = vrot.slane %v525_v6, 1  ;;  %v535_v22 = vshrl.u32 %v1624_v14, 16  ;;  %v1394_v39 = vld [vmem:[%s1496_s28 + $0xc8] ss:$0 sps:$4 sm:$0x11]   ;;  %867 = vmatpush1.bf16.msra.mxu0 %v1406_v51  ;;  %1318 = vmatprep.subr.bf16.mxu1 %v1404_v44 }
  0x2a   : > { %570 = vrot.lane.b32.xlu1 %v509_v61, %s1445_s14  ;;  %v532_v24 = vrot.slane %v530_v16, 1  ;;  %v446_v25 = vshll.u32 %v1384_v17, 16  ;;  %v537_v27 = vshll.u32 %v1624_v14, 16  ;;  %v443_v31 = vrot.slane %v441_v20, 1  ;;  %868 = vmatprep.subr.bf16.mxu0 %v1407_v52  ;;  %v1410_v58 = vld [vmem:[%s1894_s1 + $0x4] ss:$8 sps:$4 sm:$0xff]  }
  0x2b   : > { %v437_v19 = vsel %vm353_vm0, %v432_v12, %v436_v13  ;;  %v528_v23 = vor.u32 %v527_v15, %v523_v5  ;;  %v542_v38 = vshll.u32 %v1386_v32, 16  ;;  %v587_v40 = vshrl.u32 %v1635_v30, 16  ;;  %1334 = vmatpush1.bf16.msra.mxu1 %v1406_v51  ;;  %v1412_v61 = vld [vmem:[%s1894_s1] ss:$8 sps:$4 sm:$0xff]   ;;  %v1413_v62 = vld [vmem:[%s1894_s1 + $0xf4] ss:$8 sps:$4 sm:$0xff]  }
  0x2c   : > { %556 = vrot.lane.b32.xlu0 %v425_v0, %s1445_s14  ;;  %v448_v34 = vrot.slane %v446_v25, 1  ;;  %v539_v35 = vrot.slane %v537_v27, 1  ;;  %v444_v36 = vor.u32 %v443_v31, %v439_v18  ;;  %v589_v42 = vshll.u32 %v1635_v30, 16  ;;  %1319 = vmatprep.subr.bf16.mxu1 %v1407_v52  ;;  %v1415_v0 = vld [vmem:[%s1894_s1 + $0xf0] ss:$8 sps:$4 sm:$0xff]  }
  0x2d   : > { %v533_v33 = vsel %vm353_vm0, %v528_v23, %v532_v24  ;;  %v544_v46 = vrot.slane %v542_v38, 1  ;;  %v594_v49 = vshll.u32 %v1394_v39, 16  ;;  %869 = vmatpush1.bf16.msra.mxu0 %v1409_v57  ;;  %v1416_v1 = vld [vmem:[%s1894_s1 + $0xe4] ss:$8 sps:$4 sm:$0xff]   ;;  %v1418_v2 = vld [vmem:[%s1894_s1 + $0xe0] ss:$8 sps:$4 sm:$0xff]  }
  0x2e   : > { %572 = vrot.lane.b32.xlu1 %v521_v11, %s1445_s14  ;;  %v540_v43 = vor.u32 %v539_v35, %v535_v22  ;;  %v449_v45 = vsel %vm353_vm0, %v444_v36, %v448_v34  ;;  %v591_v48 = vrot.slane %v589_v42, 1  ;;  %870 = vmatprep.subr.bf16.mxu0 %v1410_v58  ;;  %v1419_v3 = vld [vmem:[%s1894_s1 + $0xd4] ss:$8 sps:$4 sm:$0xff]   ;;  %v1421_v4 = vld [vmem:[%s1894_s1 + $0xd0] ss:$8 sps:$4 sm:$0xff]  }
  0x2f   : > { %v596_v56 = vrot.slane %v594_v49, 1  ;;  %1335 = vmatpush1.bf16.msra.mxu1 %v1409_v57  ;;  %v1422_v5 = vld [vmem:[%s1894_s1 + $0xc4] ss:$8 sps:$4 sm:$0xff]   ;;  %v1424_v6 = vld [vmem:[%s1894_s1 + $0xc0] ss:$8 sps:$4 sm:$0xff]  }
  0x30   : > { %558 = vrot.lane.b32.xlu0 %v437_v19, %s1445_s14  ;;  %v545_v53 = vsel %vm353_vm0, %v540_v43, %v544_v46  ;;  %v592_v54 = vor.u32 %v591_v48, %v587_v40  ;;  %1320 = vmatprep.subr.bf16.mxu1 %v1410_v58  ;;  %v1425_v11 = vld [vmem:[%s1894_s1 + $0xb4] ss:$8 sps:$4 sm:$0xff]   ;;  %v1427_v12 = vld [vmem:[%s1894_s1 + $0xb0] ss:$8 sps:$4 sm:$0xff]   ;;  %v1428_v13 = vld [vmem:[%s1894_s1 + $0xa4] ss:$8 sps:$4 sm:$0xff]  }
  0x31   : > { %871 = vmatpush1.bf16.msra.mxu0 %v1412_v61  ;;  %v1430_v15 = vld [vmem:[%s1894_s1 + $0xa0] ss:$8 sps:$4 sm:$0xff]   ;;  %v1431_v16 = vld [vmem:[%s1894_s1 + $0x94] ss:$8 sps:$4 sm:$0xff]   ;;  %v1433_v17 = vld [vmem:[%s1894_s1 + $0x90] ss:$8 sps:$4 sm:$0xff]  }
  0x32   : > { %574 = vrot.lane.b32.xlu1 %v533_v33, %s1445_s14  ;;  %v597_v60 = vsel %vm353_vm0, %v592_v54, %v596_v56  ;;  %872 = vmatprep.subr.bf16.mxu0 %v1413_v62  ;;  %v1434_v18 = vld [vmem:[%s1894_s1 + $0x84] ss:$8 sps:$4 sm:$0xff]   ;;  %v1436_v19 = vld [vmem:[%s1894_s1 + $0x80] ss:$8 sps:$4 sm:$0xff]  }
  0x33   : > { %1336 = vmatpush1.bf16.msra.mxu1 %v1412_v61 }
  0x34   : > { %560 = vrot.lane.b32.xlu0 %v449_v45, %s1445_s14  ;;  %1321 = vmatprep.subr.bf16.mxu1 %v1413_v62 }
  0x35   : > { %873 = vmatpush2.bf16.msra.mxu0 %v1415_v0 }
  0x36   : > { %576 = vrot.lane.b32.xlu1 %v545_v53, %s1445_s14  ;;  %874 = vmatprep.subr.bf16.mxu0 %v1416_v1 }
  0x37   : > { %1337 = vmatpush2.bf16.msra.mxu1 %v1415_v0 }
  0x38   : > { %598 = vrot.lane.b32.xlu0 %v597_v60, %s1445_s14  ;;  %1322 = vmatprep.subr.bf16.mxu1 %v1416_v1 }
  0x39   : > { %875 = vmatpush2.bf16.msra.mxu0 %v1418_v2 }
  0x3a   : > { %876 = vmatprep.subr.bf16.mxu0 %v1419_v3 }
  0x3b   : > { %1338 = vmatpush2.bf16.msra.mxu1 %v1418_v2 }
  0x3c   : > { %1323 = vmatprep.subr.bf16.mxu1 %v1419_v3 }
  0x3d   : > { %877 = vmatpush2.bf16.msra.mxu0 %v1421_v4 }
  0x3e   : > { %878 = vmatprep.subr.bf16.mxu0 %v1422_v5 }
  0x3f   : > { %1339 = vmatpush2.bf16.msra.mxu1 %v1421_v4 }
  0x40   : > { %1324 = vmatprep.subr.bf16.mxu1 %v1422_v5 }
  0x41   : > { %879 = vmatpush2.bf16.msra.mxu0 %v1424_v6 }
  0x42   : > { %880 = vmatprep.subr.bf16.mxu0 %v1425_v11 }
  0x43   : > { %1340 = vmatpush2.bf16.msra.mxu1 %v1424_v6 }
  0x44   : > { %1325 = vmatprep.subr.bf16.mxu1 %v1425_v11 }
  0x45   : > { %881 = vmatpush2.bf16.msra.mxu0 %v1427_v12 }
  0x46   : > { %882 = vmatprep.subr.bf16.mxu0 %v1428_v13 }
  0x47   : > { %1341 = vmatpush2.bf16.msra.mxu1 %v1427_v12 }
  0x48   : > { %1326 = vmatprep.subr.bf16.mxu1 %v1428_v13 }
  0x49   : > { %883 = vmatpush2.bf16.msra.mxu0 %v1430_v15 }
  0x4a   : > { %884 = vmatprep.subr.bf16.mxu0 %v1431_v16 }
  0x4b   : > { %1342 = vmatpush2.bf16.msra.mxu1 %v1430_v15 }
  0x4c   : > { %1327 = vmatprep.subr.bf16.mxu1 %v1431_v16 }
  0x4d   : > { %885 = vmatpush2.bf16.msra.mxu0 %v1433_v17 }
  0x4e   : > { %886 = vmatprep.subr.bf16.mxu0 %v1434_v18 }
  0x4f   : > { %1343 = vmatpush2.bf16.msra.mxu1 %v1433_v17 }
  0x50   : > { %1328 = vmatprep.subr.bf16.mxu1 %v1434_v18 }
  0x51   : > { %887 = vmatpush2.bf16.msra.mxu0 %v1436_v19 }
  0x53   : > { %1344 = vmatpush2.bf16.msra.mxu1 %v1436_v19 }
  0x8a   : > { %v549_v20 = vpop.permute.xlu0 %548 }
  0x8b   : > { %v605_v23 = vsel %vm600_vm1, %v1505_v7, %v549_v20 }
  0x8c   : > { %v547_v22 = vpop.permute.xlu1 %546  ;;  %888 = vmatprep.mubr.bf16.mxu0 %v605_v23 }
  0x8d   : > { %v602_v24 = vsel %vm600_vm1, %v1509_v9, %v547_v22 }
  0x8e   : > { %889 = vmatmul.mubr.bf16.vlgmr.msra.gmra.mxu0 %v602_v24  ;;  %v565_v25 = vpop.permute.xlu0 %564 }
  0x8f   : > { %v629_v27 = vsel %vm600_vm1, %v1523_v21, %v565_v25 }
  0x90   : > { %v563_v31 = vpop.permute.xlu1 %562  ;;  %968 = vmatprep.mubr.bf16.mxu1 %v629_v27 }
  0x91   : > { %v626_v32 = vsel %vm600_vm1, %v1529_v28, %v563_v31 }
  0x92   : > { %969 = vmatmul.mubr.bf16.vlgmr.msra.gmra.mxu1 %v626_v32  ;;  %v551_v33 = vpop.permute.xlu0 %550 }
  0x93   : > { %v608_v34 = vsel %vm600_vm1, %v1539_v37, %v551_v33 }
  0x94   : > { %898 = vmatprep.mubr.bf16.mxu0 %v608_v34  ;;  %v567_v7 = vpop.permute.xlu1 %566 }
  0x95   : > { %v632_v9 = vsel %vm600_vm1, %v1548_v47, %v567_v7 }
  0x96   : > { %899 = vmatmul.mubr.bf16.gmra.mxu0 %v605_v23  ;;  %978 = vmatprep.mubr.bf16.mxu1 %v632_v9  ;;  %v553_v35 = vpop.permute.xlu0 %552 }
  0x97   : > { %v611_v21 = vsel %vm600_vm1, %v1556_v55, %v553_v35 }
  0x98   : > { %908 = vmatprep.mubr.bf16.mxu0 %v611_v21  ;;  %v569_v36 = vpop.permute.xlu1 %568 }
  0x99   : > { %v635_v28 = vsel %vm600_vm1, %v1560_v59, %v569_v36 }
  0x9a   : > { %979 = vmatmul.mubr.bf16.gmra.mxu1 %v629_v27  ;;  %v555_v38 = vpop.permute.xlu0 %554 }
  0x9b   : > { %988 = vmatprep.mubr.bf16.mxu1 %v635_v28  ;;  %v614_v37 = vsel %vm600_vm1, %v1571_v8, %v555_v38 }
  0x9c   : > { %v571_v39 = vpop.permute.xlu1 %570 }
  0x9d   : > { %v638_v47 = vsel %vm600_vm1, %v1581_v26, %v571_v39 }
  0x9e   : > { %909 = vmatmul.mubr.bf16.gmra.mxu0 %v608_v34  ;;  %v557_v40 = vpop.permute.xlu0 %556 }
  0x9f   : > { %918 = vmatprep.mubr.bf16.mxu0 %v614_v37  ;;  %v617_v55 = vsel %vm600_vm1, %v1586_v29, %v557_v40 }
  0xa0   : > { %v573_v42 = vpop.permute.xlu1 %572 }
  0xa1   : > { %v641_v59 = vsel %vm600_vm1, %v1597_v41, %v573_v42 }
  0xa2   : > { %989 = vmatmul.mubr.bf16.gmra.mxu1 %v632_v9  ;;  %v559_v43 = vpop.permute.xlu0 %558 }
  0xa3   : > { %998 = vmatprep.mubr.bf16.mxu1 %v638_v47  ;;  %v620_v8 = vsel %vm600_vm1, %v1604_v50, %v559_v43 }
  0xa4   : > { %v575_v44 = vpop.permute.xlu1 %574 }
  0xa5   : > { %v644_v26 = vsel %vm600_vm1, %v1611_v63, %v575_v44 }
  0xa6   : > { %919 = vmatmul.mubr.bf16.gmra.mxu0 %v611_v21  ;;  %v561_v45 = vpop.permute.xlu0 %560 }
  0xa7   : > { %928 = vmatprep.mubr.bf16.mxu0 %v617_v55  ;;  %v623_v29 = vsel %vm600_vm1, %v1620_v10, %v561_v45  ;;  %v686_v10 = vlaneseq }
  0xa8   : > { %v577_v41 = vpop.permute.xlu1 %576 }
  0xa9   : > { %v647_v46 = vsel %vm600_vm1, %v1624_v14, %v577_v41  ;;  %v687_v48 = vshrl.u32 %v686_v10, 7  ;;  %v684_v14 = vld [vmem:[%s1895_s2] sm:$0x3] }
  0xaa   : > { %999 = vmatmul.mubr.bf16.gmra.mxu1 %v635_v28  ;;  %v599_v50 = vpop.permute.xlu0 %598 }
  0xab   : > { %1008 = vmatprep.mubr.bf16.mxu1 %v641_v59  ;;  %v650_v63 = vsel %vm600_vm1, %v1635_v30, %v599_v50  ;;  %v688_v49 = vsub.s32 0, %v687_v48  ;;  %v692_v51 = vsub.s32 1, %v687_v48 }
  0xad   : > { %v1753_v52 = vrot.slane %v684_v14, %v688_v49  ;;  %v1755_v53 = vrot.slane %v684_v14, %v692_v51 }
  0xae   : > { %929 = vmatmul.mubr.bf16.gmra.mxu0 %v614_v37 }
  0xaf   : > { %938 = vmatprep.mubr.bf16.mxu0 %v620_v8 }
  0xb2   : > { %1009 = vmatmul.mubr.bf16.gmra.mxu1 %v638_v47 }
  0xb3   : > { %1018 = vmatprep.mubr.bf16.mxu1 %v644_v26 }
  0xb6   : > { %939 = vmatmul.mubr.bf16.gmra.mxu0 %v617_v55 }
  0xb7   : > { %948 = vmatprep.mubr.bf16.mxu0 %v623_v29 }
  0xba   : > { %1019 = vmatmul.mubr.bf16.gmra.mxu1 %v641_v59 }
  0xbb   : > { %1028 = vmatprep.mubr.bf16.mxu1 %v647_v46 }
  0xbe   : > { %949 = vmatmul.mubr.bf16.gmra.mxu0 %v620_v8 }
  0xbf   : > { %958 = vmatprep.mubr.bf16.mxu0 %v626_v32 }
  0xc2   : > { %1029 = vmatmul.mubr.bf16.gmra.mxu1 %v644_v26 }
  0xc3   : > { %1038 = vmatprep.mubr.bf16.mxu1 %v650_v63 }
  0xc6   : > { %959 = vmatmul.mubr.bf16.gmra.mxu0 %v623_v29 }
  0xca   : > { %1039 = vmatmul.mubr.bf16.gmra.mxu1 %v647_v46 }
 0x14e   : > { %v890_v30 = vpop.f32.mrf.mxu0 }
 0x14f   : > { %v891_v54 = vadd.f32 %v890_v30, %v1753_v52 }
 0x150   : > { %v892_v56 = vpop.f32.mrf.mxu0 }
 0x151   : > { %v1049_v57 = vmax.f32 %v891_v54, 0.0  ;;  %v893_v58 = vadd.f32 %v892_v56, %v1755_v53 }
 0x152   : > { %v894_v60 = vpop.f32.mrf.mxu0  ;;  %v970_v0 = vpop.f32.mrf.mxu1 }
 0x153   : > { %1113 = vst [vmem:[%s1761_s13] sm:$0xff] %v1049_v57  ;;  %v1050_v61 = vmax.f32 %v893_v58, 0.0  ;;  %v895_v62 = vadd.f32 %v894_v60, %v1753_v52  ;;  %v971_v1 = vadd.f32 %v970_v0, %v1753_v52 }
 0x154   : > { %v896_v2 = vpop.f32.mrf.mxu0  ;;  %v972_v5 = vpop.f32.mrf.mxu1 }
 0x155   : > { %1114 = vst [vmem:[%s1761_s13 + $0x8] sm:$0xff] %v1050_v61  ;;  %v1051_v3 = vmax.f32 %v895_v62, 0.0  ;;  %v897_v4 = vadd.f32 %v896_v2, %v1755_v53  ;;  %v1081_v6 = vmax.f32 %v971_v1, 0.0  ;;  %v973_v11 = vadd.f32 %v972_v5, %v1755_v53 }
 0x156   : > { %v900_v12 = vpop.f32.mrf.mxu0  ;;  %v974_v16 = vpop.f32.mrf.mxu1 }
 0x157   : > { %1115 = vst [vmem:[%s1761_s13 + $0x10] sm:$0xff] %v1051_v3  ;;  %v1052_v13 = vmax.f32 %v897_v4, 0.0  ;;  %v901_v15 = vadd.f32 %v900_v12, %v1753_v52  ;;  %1145 = vst [vmem:[%s1761_s13 + $0x100] sm:$0xff] %v1081_v6  ;;  %v1082_v17 = vmax.f32 %v973_v11, 0.0  ;;  %v975_v18 = vadd.f32 %v974_v16, %v1753_v52 }
 0x158   : > { %v902_v19 = vpop.f32.mrf.mxu0  ;;  %v976_v23 = vpop.f32.mrf.mxu1 }
 0x159   : > { %1116 = vst [vmem:[%s1761_s13 + $0x18] sm:$0xff] %v1052_v13  ;;  %v1053_v20 = vmax.f32 %v901_v15, 0.0  ;;  %v903_v22 = vadd.f32 %v902_v19, %v1755_v53  ;;  %1146 = vst [vmem:[%s1761_s13 + $0x108] sm:$0xff] %v1082_v17  ;;  %v1083_v24 = vmax.f32 %v975_v18, 0.0  ;;  %v977_v25 = vadd.f32 %v976_v23, %v1755_v53 }
 0x15a   : > { %v904_v27 = vpop.f32.mrf.mxu0  ;;  %v980_v33 = vpop.f32.mrf.mxu1 }
 0x15b   : > { %1117 = vst [vmem:[%s1761_s13 + $0x20] sm:$0xff] %v1053_v20  ;;  %v1054_v31 = vmax.f32 %v903_v22, 0.0  ;;  %v905_v32 = vadd.f32 %v904_v27, %v1753_v52  ;;  %1147 = vst [vmem:[%s1761_s13 + $0x110] sm:$0xff] %v1083_v24  ;;  %v1084_v34 = vmax.f32 %v977_v25, 0.0  ;;  %v981_v7 = vadd.f32 %v980_v33, %v1753_v52 }
 0x15c   : > { %v906_v9 = vpop.f32.mrf.mxu0  ;;  %v982_v36 = vpop.f32.mrf.mxu1 }
 0x15d   : > { %1118 = vst [vmem:[%s1761_s13 + $0x28] sm:$0xff] %v1054_v31  ;;  %v1055_v35 = vmax.f32 %v905_v32, 0.0  ;;  %v907_v21 = vadd.f32 %v906_v9, %v1755_v53  ;;  %1148 = vst [vmem:[%s1761_s13 + $0x118] sm:$0xff] %v1084_v34  ;;  %v1085_v28 = vmax.f32 %v981_v7, 0.0  ;;  %v983_v38 = vadd.f32 %v982_v36, %v1755_v53 }
 0x15e   : > { %v910_v37 = vpop.f32.mrf.mxu0  ;;  %v984_v40 = vpop.f32.mrf.mxu1 }
 0x15f   : > { %1119 = vst [vmem:[%s1761_s13 + $0x30] sm:$0xff] %v1055_v35  ;;  %v1056_v39 = vmax.f32 %v907_v21, 0.0  ;;  %v911_v47 = vadd.f32 %v910_v37, %v1753_v52  ;;  %1149 = vst [vmem:[%s1761_s13 + $0x120] sm:$0xff] %v1085_v28  ;;  %v1086_v55 = vmax.f32 %v983_v38, 0.0  ;;  %v985_v42 = vadd.f32 %v984_v40, %v1753_v52 }
 0x160   : > { %v912_v59 = vpop.f32.mrf.mxu0  ;;  %v986_v44 = vpop.f32.mrf.mxu1 }
 0x161   : > { %1120 = vst [vmem:[%s1761_s13 + $0x38] sm:$0xff] %v1056_v39  ;;  %v1057_v43 = vmax.f32 %v911_v47, 0.0  ;;  %v913_v8 = vadd.f32 %v912_v59, %v1755_v53  ;;  %1150 = vst [vmem:[%s1761_s13 + $0x128] sm:$0xff] %v1086_v55  ;;  %v1087_v26 = vmax.f32 %v985_v42, 0.0  ;;  %v987_v45 = vadd.f32 %v986_v44, %v1755_v53 }
 0x162   : > { %v914_v29 = vpop.f32.mrf.mxu0  ;;  %v990_v50 = vpop.f32.mrf.mxu1 }
 0x163   : > { %1121 = vst [vmem:[%s1761_s13 + $0x40] sm:$0xff] %v1057_v43  ;;  %v1058_v41 = vmax.f32 %v913_v8, 0.0  ;;  %v915_v46 = vadd.f32 %v914_v29, %v1753_v52  ;;  %1151 = vst [vmem:[%s1761_s13 + $0x130] sm:$0xff] %v1087_v26  ;;  %v1088_v63 = vmax.f32 %v987_v45, 0.0  ;;  %v991_v10 = vadd.f32 %v990_v50, %v1753_v52 }
 0x164   : > { %v916_v48 = vpop.f32.mrf.mxu0  ;;  %v992_v51 = vpop.f32.mrf.mxu1 }
 0x165   : > { %1122 = vst [vmem:[%s1761_s13 + $0x48] sm:$0xff] %v1058_v41  ;;  %v1059_v49 = vmax.f32 %v915_v46, 0.0  ;;  %v917_v14 = vadd.f32 %v916_v48, %v1755_v53  ;;  %1152 = vst [vmem:[%s1761_s13 + $0x138] sm:$0xff] %v1088_v63  ;;  %v1089_v30 = vmax.f32 %v991_v10, 0.0  ;;  %v993_v54 = vadd.f32 %v992_v51, %v1755_v53 }
 0x166   : > { %v920_v56 = vpop.f32.mrf.mxu0  ;;  %v994_v60 = vpop.f32.mrf.mxu1 }
 0x167   : > { %1123 = vst [vmem:[%s1761_s13 + $0x50] sm:$0xff] %v1059_v49  ;;  %v1060_v57 = vmax.f32 %v917_v14, 0.0  ;;  %v921_v58 = vadd.f32 %v920_v56, %v1753_v52  ;;  %1153 = vst [vmem:[%s1761_s13 + $0x140] sm:$0xff] %v1089_v30  ;;  %v1090_v61 = vmax.f32 %v993_v54, 0.0  ;;  %v995_v62 = vadd.f32 %v994_v60, %v1753_v52 }
 0x168   : > { %v922_v0 = vpop.f32.mrf.mxu0  ;;  %v996_v3 = vpop.f32.mrf.mxu1 }
 0x169   : > { %1124 = vst [vmem:[%s1761_s13 + $0x58] sm:$0xff] %v1060_v57  ;;  %v1061_v1 = vmax.f32 %v921_v58, 0.0  ;;  %v923_v2 = vadd.f32 %v922_v0, %v1755_v53  ;;  %1154 = vst [vmem:[%s1761_s13 + $0x148] sm:$0xff] %v1090_v61  ;;  %v1091_v4 = vmax.f32 %v995_v62, 0.0  ;;  %v997_v5 = vadd.f32 %v996_v3, %v1755_v53 }
 0x16a   : > { %v924_v6 = vpop.f32.mrf.mxu0  ;;  %v1000_v13 = vpop.f32.mrf.mxu1 }
 0x16b   : > { %1125 = vst [vmem:[%s1761_s13 + $0x60] sm:$0xff] %v1061_v1  ;;  %v1062_v11 = vmax.f32 %v923_v2, 0.0  ;;  %v925_v12 = vadd.f32 %v924_v6, %v1753_v52  ;;  %1155 = vst [vmem:[%s1761_s13 + $0x150] sm:$0xff] %v1091_v4  ;;  %v1092_v15 = vmax.f32 %v997_v5, 0.0  ;;  %v1001_v16 = vadd.f32 %v1000_v13, %v1753_v52 }
 0x16c   : > { %v926_v17 = vpop.f32.mrf.mxu0  ;;  %v1002_v20 = vpop.f32.mrf.mxu1 }
 0x16d   : > { %1126 = vst [vmem:[%s1761_s13 + $0x68] sm:$0xff] %v1062_v11  ;;  %v1063_v18 = vmax.f32 %v925_v12, 0.0  ;;  %v927_v19 = vadd.f32 %v926_v17, %v1755_v53  ;;  %1156 = vst [vmem:[%s1761_s13 + $0x158] sm:$0xff] %v1092_v15  ;;  %v1093_v22 = vmax.f32 %v1001_v16, 0.0  ;;  %v1003_v23 = vadd.f32 %v1002_v20, %v1755_v53 }
 0x16e   : > { %v930_v24 = vpop.f32.mrf.mxu0  ;;  %v1004_v31 = vpop.f32.mrf.mxu1 }
 0x16f   : > { %1127 = vst [vmem:[%s1761_s13 + $0x70] sm:$0xff] %v1063_v18  ;;  %v1064_v25 = vmax.f32 %v927_v19, 0.0  ;;  %v931_v27 = vadd.f32 %v930_v24, %v1753_v52  ;;  %1157 = vst [vmem:[%s1761_s13 + $0x160] sm:$0xff] %v1093_v22  ;;  %v1094_v32 = vmax.f32 %v1003_v23, 0.0  ;;  %v1005_v33 = vadd.f32 %v1004_v31, %v1753_v52 }
 0x170   : > { %v932_v34 = vpop.f32.mrf.mxu0  ;;  %v1006_v35 = vpop.f32.mrf.mxu1 }
 0x171   : > { %1128 = vst [vmem:[%s1761_s13 + $0x78] sm:$0xff] %v1064_v25  ;;  %v1065_v7 = vmax.f32 %v931_v27, 0.0  ;;  %v933_v9 = vadd.f32 %v932_v34, %v1755_v53  ;;  %1158 = vst [vmem:[%s1761_s13 + $0x168] sm:$0xff] %v1094_v32  ;;  %v1095_v21 = vmax.f32 %v1005_v33, 0.0  ;;  %v1007_v36 = vadd.f32 %v1006_v35, %v1755_v53 }
 0x172   : > { %v934_v28 = vpop.f32.mrf.mxu0  ;;  %v1010_v39 = vpop.f32.mrf.mxu1 }
 0x173   : > { %1129 = vst [vmem:[%s1761_s13 + $0x80] sm:$0xff] %v1065_v7  ;;  %v1066_v38 = vmax.f32 %v933_v9, 0.0  ;;  %v935_v37 = vadd.f32 %v934_v28, %v1753_v52  ;;  %1159 = vst [vmem:[%s1761_s13 + $0x170] sm:$0xff] %v1095_v21  ;;  %v1096_v47 = vmax.f32 %v1007_v36, 0.0  ;;  %v1011_v40 = vadd.f32 %v1010_v39, %v1753_v52 }
 0x174   : > { %v936_v55 = vpop.f32.mrf.mxu0  ;;  %v1012_v43 = vpop.f32.mrf.mxu1 }
 0x175   : > { %1130 = vst [vmem:[%s1761_s13 + $0x88] sm:$0xff] %v1066_v38  ;;  %v1067_v42 = vmax.f32 %v935_v37, 0.0  ;;  %v937_v59 = vadd.f32 %v936_v55, %v1755_v53  ;;  %1160 = vst [vmem:[%s1761_s13 + $0x178] sm:$0xff] %v1096_v47  ;;  %v1097_v8 = vmax.f32 %v1011_v40, 0.0  ;;  %v1013_v44 = vadd.f32 %v1012_v43, %v1755_v53 }
 0x176   : > { %v940_v26 = vpop.f32.mrf.mxu0  ;;  %v1014_v41 = vpop.f32.mrf.mxu1 }
 0x177   : > { %1131 = vst [vmem:[%s1761_s13 + $0x90] sm:$0xff] %v1067_v42  ;;  %v1068_v45 = vmax.f32 %v937_v59, 0.0  ;;  %v941_v29 = vadd.f32 %v940_v26, %v1753_v52  ;;  %1161 = vst [vmem:[%s1761_s13 + $0x180] sm:$0xff] %v1097_v8  ;;  %v1098_v46 = vmax.f32 %v1013_v44, 0.0  ;;  %v1015_v50 = vadd.f32 %v1014_v41, %v1753_v52 }
 0x178   : > { %v942_v63 = vpop.f32.mrf.mxu0  ;;  %v1016_v49 = vpop.f32.mrf.mxu1 }
 0x179   : > { %1132 = vst [vmem:[%s1761_s13 + $0x98] sm:$0xff] %v1068_v45  ;;  %v1069_v10 = vmax.f32 %v941_v29, 0.0  ;;  %v943_v48 = vadd.f32 %v942_v63, %v1755_v53  ;;  %1162 = vst [vmem:[%s1761_s13 + $0x188] sm:$0xff] %v1098_v46  ;;  %v1099_v14 = vmax.f32 %v1015_v50, 0.0  ;;  %v1017_v51 = vadd.f32 %v1016_v49, %v1755_v53 }
 0x17a   : > { %v944_v30 = vpop.f32.mrf.mxu0  ;;  %v1020_v57 = vpop.f32.mrf.mxu1 }
 0x17b   : > { %1133 = vst [vmem:[%s1761_s13 + $0xa0] sm:$0xff] %v1069_v10  ;;  %v1070_v54 = vmax.f32 %v943_v48, 0.0  ;;  %v945_v56 = vadd.f32 %v944_v30, %v1753_v52  ;;  %1163 = vst [vmem:[%s1761_s13 + $0x190] sm:$0xff] %v1099_v14  ;;  %v1100_v58 = vmax.f32 %v1017_v51, 0.0  ;;  %v1021_v60 = vadd.f32 %v1020_v57, %v1753_v52 }
 0x17c   : > { %v946_v61 = vpop.f32.mrf.mxu0  ;;  %v1022_v1 = vpop.f32.mrf.mxu1 }
 0x17d   : > { %1134 = vst [vmem:[%s1761_s13 + $0xa8] sm:$0xff] %v1070_v54  ;;  %v1071_v62 = vmax.f32 %v945_v56, 0.0  ;;  %v947_v0 = vadd.f32 %v946_v61, %v1755_v53  ;;  %1164 = vst [vmem:[%s1761_s13 + $0x198] sm:$0xff] %v1100_v58  ;;  %v1101_v2 = vmax.f32 %v1021_v60, 0.0  ;;  %v1023_v3 = vadd.f32 %v1022_v1, %v1755_v53 }
 0x17e   : > { %v950_v4 = vpop.f32.mrf.mxu0  ;;  %v1024_v11 = vpop.f32.mrf.mxu1 }
 0x17f   : > { %1135 = vst [vmem:[%s1761_s13 + $0xb0] sm:$0xff] %v1071_v62  ;;  %v1072_v5 = vmax.f32 %v947_v0, 0.0  ;;  %v951_v6 = vadd.f32 %v950_v4, %v1753_v52  ;;  %1165 = vst [vmem:[%s1761_s13 + $0x1a0] sm:$0xff] %v1101_v2  ;;  %v1102_v12 = vmax.f32 %v1023_v3, 0.0  ;;  %v1025_v13 = vadd.f32 %v1024_v11, %v1753_v52 }
 0x180   : > { %v952_v15 = vpop.f32.mrf.mxu0  ;;  %v1026_v18 = vpop.f32.mrf.mxu1 }
 0x181   : > { %1136 = vst [vmem:[%s1761_s13 + $0xb8] sm:$0xff] %v1072_v5  ;;  %v1073_v16 = vmax.f32 %v951_v6, 0.0  ;;  %v953_v17 = vadd.f32 %v952_v15, %v1755_v53  ;;  %1166 = vst [vmem:[%s1761_s13 + $0x1a8] sm:$0xff] %v1102_v12  ;;  %v1103_v19 = vmax.f32 %v1025_v13, 0.0  ;;  %v1027_v20 = vadd.f32 %v1026_v18, %v1755_v53 }
 0x182   : > { %v954_v22 = vpop.f32.mrf.mxu0  ;;  %v1030_v25 = vpop.f32.mrf.mxu1 }
 0x183   : > { %1137 = vst [vmem:[%s1761_s13 + $0xc0] sm:$0xff] %v1073_v16  ;;  %v1074_v23 = vmax.f32 %v953_v17, 0.0  ;;  %v955_v24 = vadd.f32 %v954_v22, %v1753_v52  ;;  %1167 = vst [vmem:[%s1761_s13 + $0x1b0] sm:$0xff] %v1103_v19  ;;  %v1104_v27 = vmax.f32 %v1027_v20, 0.0  ;;  %v1031_v31 = vadd.f32 %v1030_v25, %v1753_v52 }
 0x184   : > { %v956_v32 = vpop.f32.mrf.mxu0  ;;  %v1032_v7 = vpop.f32.mrf.mxu1 }
 0x185   : > { %1138 = vst [vmem:[%s1761_s13 + $0xc8] sm:$0xff] %v1074_v23  ;;  %v1075_v33 = vmax.f32 %v955_v24, 0.0  ;;  %v957_v34 = vadd.f32 %v956_v32, %v1755_v53  ;;  %1168 = vst [vmem:[%s1761_s13 + $0x1b8] sm:$0xff] %v1104_v27  ;;  %v1105_v9 = vmax.f32 %v1031_v31, 0.0  ;;  %v1033_v35 = vadd.f32 %v1032_v7, %v1755_v53 }
 0x186   : > { %v960_v21 = vpop.f32.mrf.mxu0  ;;  %v1034_v38 = vpop.f32.mrf.mxu1 }
 0x187   : > { %1139 = vst [vmem:[%s1761_s13 + $0xd0] sm:$0xff] %v1075_v33  ;;  %v1076_v36 = vmax.f32 %v957_v34, 0.0  ;;  %v961_v28 = vadd.f32 %v960_v21, %v1753_v52  ;;  %1169 = vst [vmem:[%s1761_s13 + $0x1c0] sm:$0xff] %v1105_v9  ;;  %v1106_v37 = vmax.f32 %v1033_v35, 0.0  ;;  %v1035_v39 = vadd.f32 %v1034_v38, %v1753_v52 }
 0x188   : > { %v962_v47 = vpop.f32.mrf.mxu0  ;;  %v1036_v42 = vpop.f32.mrf.mxu1 }
 0x189   : > { %1140 = vst [vmem:[%s1761_s13 + $0xd8] sm:$0xff] %v1076_v36  ;;  %v1077_v40 = vmax.f32 %v961_v28, 0.0  ;;  %v963_v55 = vadd.f32 %v962_v47, %v1755_v53  ;;  %1170 = vst [vmem:[%s1761_s13 + $0x1c8] sm:$0xff] %v1106_v37  ;;  %v1107_v59 = vmax.f32 %v1035_v39, 0.0  ;;  %v1037_v43 = vadd.f32 %v1036_v42, %v1755_v53 }
 0x18a   : > { %v964_v8 = vpop.f32.mrf.mxu0  ;;  %v1040_v45 = vpop.f32.mrf.mxu1 }
 0x18b   : > { %1141 = vst [vmem:[%s1761_s13 + $0xe0] sm:$0xff] %v1077_v40  ;;  %v1078_v44 = vmax.f32 %v963_v55, 0.0  ;;  %v965_v26 = vadd.f32 %v964_v8, %v1753_v52  ;;  %1171 = vst [vmem:[%s1761_s13 + $0x1d0] sm:$0xff] %v1107_v59  ;;  %v1108_v29 = vmax.f32 %v1037_v43, 0.0  ;;  %v1041_v41 = vadd.f32 %v1040_v45, %v1753_v52 }
 0x18c   : > { %v966_v46 = vpop.f32.mrf.mxu0  ;;  %v1042_v10 = vpop.f32.mrf.mxu1 }
 0x18d   : > { %1142 = vst [vmem:[%s1761_s13 + $0xe8] sm:$0xff] %v1078_v44  ;;  %v1079_v50 = vmax.f32 %v965_v26, 0.0  ;;  %v967_v63 = vadd.f32 %v966_v46, %v1755_v53  ;;  %1172 = vst [vmem:[%s1761_s13 + $0x1d8] sm:$0xff] %v1108_v29  ;;  %v1109_v48 = vmax.f32 %v1041_v41, 0.0  ;;  %v1043_v49 = vadd.f32 %v1042_v10, %v1755_v53 }
 0x18e   : > { %v1044_v51 = vpop.f32.mrf.mxu1 }
 0x18f   : > { %1143 = vst [vmem:[%s1761_s13 + $0xf0] sm:$0xff] %v1079_v50  ;;  %v1080_v14 = vmax.f32 %v967_v63, 0.0  ;;  %1173 = vst [vmem:[%s1761_s13 + $0x1e0] sm:$0xff] %v1109_v48  ;;  %v1110_v30 = vmax.f32 %v1043_v49, 0.0  ;;  %v1045_v54 = vadd.f32 %v1044_v51, %v1753_v52 }
 0x190   : > { %v1046_v56 = vpop.f32.mrf.mxu1 }
 0x191   : > { %1144 = vst [vmem:[%s1761_s13 + $0xf8] sm:$0xff] %v1080_v14  ;;  %1174 = vst [vmem:[%s1761_s13 + $0x1e8] sm:$0xff] %v1110_v30  ;;  %v1111_v57 = vmax.f32 %v1045_v54, 0.0  ;;  %v1047_v58 = vadd.f32 %v1046_v56, %v1755_v53 }
 0x193   : > { %1175 = vst [vmem:[%s1761_s13 + $0x1f0] sm:$0xff] %v1111_v57  ;;  %v1112_v60 = vmax.f32 %v1047_v58, 0.0 }
 0x195   : > { %1176 = vst [vmem:[%s1761_s13 + $0x1f8] sm:$0xff] %v1112_v60 }
 0x196 PF: > { %s13_s12 = sadd.s32 1, %s1443_s12  }
 0x197   : > { %p10_p5 = scmp.ge.s32.totalorder %s13_s12, 4  }
 0x199   :  { %12 = sbr.rel (!%p10_p5) target bundleno = 1 (0x1), region = 62 }

</bundles_post_ra>
